<compile_context>
chip_gen: v7x
topology: tpu7x:2x2x1
jax: 0.10.0
libtpu: 0.0.40
codegen_flags: <defaults>
</compile_context>

<pallas_src>
import jax
import jax.numpy as jnp
from jax.experimental import pallas as pl
from jax.experimental.pallas import tpu as pltpu

BN_EPS = 1e-5


def _round_up(n, m):
    return ((n + m - 1) // m) * m


# ----------------------------------------------------------------------------
# Kernel: 4 x (dot -> bias -> relu) + lane-dense final reduce.
# ----------------------------------------------------------------------------
def topodockq_kernel(x_ref, w1, b1, w2, b2, w3, b3, w4, b4, w5, b5, o_ref):
    cdt = x_ref.dtype                      # compute dtype fed to the MXU
    h = x_ref[...]                         # (bt, D)
    # TODO(synk): training-mode dropout (random mask) not implemented; eval-mode identity.
    for w_ref, b_ref in ((w1, b1), (w2, b2), (w3, b3), (w4, b4)):
        z = jnp.dot(h, w_ref[...], preferred_element_type=jnp.float32) + b_ref[...]
        h = jnp.maximum(z, 0.0).astype(cdt)          # f32 accum -> relu -> cdt
    # Output layer (n4 -> 1): lane-wise reduce instead of an N=1 MXU matmul,
    # written as a lane-dense row (avoids masked (bt, 1) partial stores).
    hf = h.astype(jnp.float32)
    o = jnp.sum(hf * w5[...], axis=-1)               # (bt,)
    o_ref[...] = o.reshape(1, 1, -1) + b5[...]       # (1, 1, bt)


# ----------------------------------------------------------------------------
# BN folding (eval mode) + dtype prep done once in the wrapper.
# ----------------------------------------------------------------------------
def fold_bn_into_linear(raw_params, compute_dtype):
    """raw_params: [w,b,g,beta,mean,var]*4 + [w5,b5] -> [w',b']*4 + [w5_row,b5]."""
    p = list(raw_params)
    out = []
    for _ in range(4):
        w, b, g, be, m, v = p[:6]
        p = p[6:]
        scale = g * jax.lax.rsqrt(v + BN_EPS)                 # (1, fo)
        out.append((w * scale).astype(compute_dtype))         # (fi, fo)
        out.append(((b - m) * scale + be).astype(jnp.float32))  # (1, fo)
    w5, b5 = p
    out.append(w5.reshape(1, -1).astype(jnp.float32))         # (1, n4) row
    out.append(b5.reshape(1, 1).astype(jnp.float32))          # (1, 1)
    return out


def topodockq_forward(x, raw_params, *, batch_tile=256, compute_dtype=jnp.bfloat16):
    """x: (B, input_dim) f32.  raw_params: PyTorch-style params (see make_params)."""
    B, D = x.shape
    params = fold_bn_into_linear(raw_params, compute_dtype)
    w1, b1, w2, b2, w3, b3, w4, b4, w5, b5 = params
    n1, n2, n3, n4 = w1.shape[1], w2.shape[1], w3.shape[1], w4.shape[1]

    # Large batch tiles amortize the ~0.35us per-grid-step overhead; pad the
    # batch so the grid divides evenly (pad rows are discarded at the end).
    bt = min(batch_tile, _round_up(B, 8))
    B_pad = _round_up(B, bt)
    if B_pad != B:
        x = jnp.pad(x, ((0, B_pad - B), (0, 0)))
    x = x.astype(compute_dtype)
    num_tiles = B_pad // bt

    x_spec = pl.BlockSpec((bt, D), lambda i: (i, 0))
    param_specs = [pl.BlockSpec(p.shape, lambda i: (0, 0)) for p in params]
    # Lane-dense output: one (1, 1, bt) row per grid step.
    out_spec = pl.BlockSpec((1, 1, bt), lambda i: (i, 0, 0))

    flops = 2 * B_pad * (D * n1 + n1 * n2 + n2 * n3 + n3 * n4 + n4)
    bytes_accessed = int(
        x.size * x.dtype.itemsize
        + sum(int(p.size) * p.dtype.itemsize for p in params)
        + B_pad * 4
    )

    out = pl.pallas_call(
        topodockq_kernel,
        out_shape=jax.ShapeDtypeStruct((num_tiles, 1, bt), jnp.float32),
        grid=(num_tiles,),
        in_specs=[x_spec] + param_specs,
        out_specs=out_spec,
        compiler_params=pltpu.CompilerParams(dimension_semantics=("parallel",)),
        cost_estimate=pl.CostEstimate(
            flops=int(flops), transcendentals=0, bytes_accessed=bytes_accessed
        ),
    )(x, *params)

    return out.reshape(-1)[:B].reshape(B, 1)


# ----------------------------------------------------------------------------
# Deterministic parameter construction (Xavier-uniform weights, like __init__).
# ----------------------------------------------------------------------------
def xavier_uniform(key, fan_in, fan_out):
    limit = jnp.sqrt(6.0 / (fan_in + fan_out))
    return jax.random.uniform(
        key, (fan_in, fan_out), dtype=jnp.float32, minval=-limit, maxval=limit
    )


def make_params(key, input_dim, n1, n2, n3, n4):
    dims = [(input_dim, n1), (n1, n2), (n2, n3), (n3, n4), (n4, 1)]
    params = []
    keys = jax.random.split(key, 4 * len(dims))
    ki = 0
    for li, (fi, fo) in enumerate(dims):
        w = xavier_uniform(keys[ki], fi, fo); ki += 1
        bb = 1.0 / jnp.sqrt(jnp.float32(fi))
        b = jax.random.uniform(keys[ki], (1, fo), jnp.float32, -bb, bb); ki += 1
        params.append(w)
        params.append(b)
        if li < 4:  # BatchNorm params for the first four layers
            gamma = jnp.ones((1, fo), jnp.float32)
            beta = jnp.zeros((1, fo), jnp.float32)
            mean = 0.1 * jax.random.normal(keys[ki], (1, fo), jnp.float32); ki += 1
            var = 1.0 + 0.1 * jax.random.uniform(keys[ki], (1, fo), jnp.float32); ki += 1
            params += [gamma, beta, mean, var]
    return params


# ----------------------------------------------------------------------------
# Pure-JAX references.
# ----------------------------------------------------------------------------
def reference_forward_f32(x, raw_params):
    """Original eval-mode forward (un-folded BN, f32 everywhere)."""
    p = list(raw_params)
    h = x
    for _ in range(4):
        w, b, g, be, m, v = p[:6]
        p = p[6:]
        h = h @ w + b
        h = (h - m) * (g * jax.lax.rsqrt(v + BN_EPS)) + be
        h = jnp.maximum(h, 0.0)
    w, b = p
    return h @ w + b


def reference_forward_folded(x, raw_params, compute_dtype):
    """Reference that mirrors the kernel's folded-BN / mixed-precision numerics."""
    p = fold_bn_into_linear(raw_params, compute_dtype)
    h = x.astype(compute_dtype)
    for li in range(4):
        w, b = p[2 * li], p[2 * li + 1]
        z = jnp.dot(h, w, preferred_element_type=jnp.float32) + b
        h = jnp.maximum(z, 0.0).astype(compute_dtype)
    w5, b5 = p[8], p[9]
    return jnp.sum(h.astype(jnp.float32) * w5, axis=-1, keepdims=True) + b5


if __name__ == "__main__":
    # Small shapes consistent with the module.
    B, input_dim = 512, 32
    n1, n2, n3, n4 = 64, 64, 32, 32

    key = jax.random.PRNGKey(0)
    kx, kp = jax.random.split(key)
    x = jax.random.normal(kx, (B, input_dim), dtype=jnp.float32)
    raw_params = make_params(kp, input_dim, n1, n2, n3, n4)

    # bf16 MXU path (default): validate against a reference with identical numerics.
    out_bf16 = topodockq_forward(x, raw_params, batch_tile=256,
                                 compute_dtype=jnp.bfloat16)
    out_bf16 = jax.block_until_ready(out_bf16)
    ref_bf16 = reference_forward_folded(x, raw_params, jnp.bfloat16)
    assert out_bf16.shape == (B, 1)
    assert jnp.allclose(out_bf16, ref_bf16, atol=1e-3, rtol=1e-3), (
        f"bf16 mismatch: max abs err {jnp.max(jnp.abs(out_bf16 - ref_bf16))}"
    )

    # f32 path: validate full module semantics against the un-folded reference.
    out_f32 = topodockq_forward(x, raw_params, batch_tile=256,
                                compute_dtype=jnp.float32)
    out_f32 = jax.block_until_ready(out_f32)
    ref_f32 = reference_forward_f32(x, raw_params)
    assert out_f32.shape == (B, 1)
    assert jnp.allclose(out_f32, ref_f32, atol=2e-4, rtol=2e-4), (
        f"f32 mismatch: max abs err {jnp.max(jnp.abs(out_f32 - ref_f32))}"
    )

    print("KERNEL_OK")
</pallas_src>

<mosaic_0001>
module attributes {stable_mosaic.version = 11 : i64} {
  func.func @topodockq_kernel(%arg0: i32, %arg1: memref<256x32xbf16, #tpu.memory_space<vmem>>, %arg2: memref<32x64xbf16, #tpu.memory_space<vmem>>, %arg3: memref<1x64xf32, #tpu.memory_space<vmem>>, %arg4: memref<64x64xbf16, #tpu.memory_space<vmem>>, %arg5: memref<1x64xf32, #tpu.memory_space<vmem>>, %arg6: memref<64x32xbf16, #tpu.memory_space<vmem>>, %arg7: memref<1x32xf32, #tpu.memory_space<vmem>>, %arg8: memref<32x32xbf16, #tpu.memory_space<vmem>>, %arg9: memref<1x32xf32, #tpu.memory_space<vmem>>, %arg10: memref<1x32xf32, #tpu.memory_space<vmem>>, %arg11: memref<1x1xf32, #tpu.memory_space<vmem>>, %arg12: memref<1x1x256xf32, #tpu.memory_space<vmem>>) attributes {dimension_semantics = [#tpu.dimension_semantics<parallel>], iteration_bounds = array<i64: 2>, scalar_prefetch = 0 : i64, scratch_operands = 0 : i64, tpu.core_type = #tpu.core_type<tc>, window_params = [{transform_indices = @transform_0, window_bounds = array<i64: 256, 32>}, {pipeline_mode = #tpu.pipeline_mode<synchronous>, transform_indices = @transform_1, window_bounds = array<i64: 32, 64>}, {pipeline_mode = #tpu.pipeline_mode<synchronous>, transform_indices = @transform_2, window_bounds = array<i64: 1, 64>}, {pipeline_mode = #tpu.pipeline_mode<synchronous>, transform_indices = @transform_3, window_bounds = array<i64: 64, 64>}, {pipeline_mode = #tpu.pipeline_mode<synchronous>, transform_indices = @transform_4, window_bounds = array<i64: 1, 64>}, {pipeline_mode = #tpu.pipeline_mode<synchronous>, transform_indices = @transform_5, window_bounds = array<i64: 64, 32>}, {pipeline_mode = #tpu.pipeline_mode<synchronous>, transform_indices = @transform_6, window_bounds = array<i64: 1, 32>}, {pipeline_mode = #tpu.pipeline_mode<synchronous>, transform_indices = @transform_7, window_bounds = array<i64: 32, 32>}, {pipeline_mode = #tpu.pipeline_mode<synchronous>, transform_indices = @transform_8, window_bounds = array<i64: 1, 32>}, {pipeline_mode = #tpu.pipeline_mode<synchronous>, transform_indices = @transform_9, window_bounds = array<i64: 1, 32>}, {pipeline_mode = #tpu.pipeline_mode<synchronous>, transform_indices = @transform_10, window_bounds = array<i64: 1, 1>}, {transform_indices = @transform_11, window_bounds = array<i64: 1, 1, 256>}]} {
    %c0 = arith.constant 0 : index
    %c0_0 = arith.constant 0 : index
    %0 = vector.load %arg1[%c0, %c0_0] : memref<256x32xbf16, #tpu.memory_space<vmem>>, vector<256x32xbf16>
    %c0_1 = arith.constant 0 : index
    %c0_2 = arith.constant 0 : index
    %1 = vector.load %arg2[%c0_1, %c0_2] : memref<32x64xbf16, #tpu.memory_space<vmem>>, vector<32x64xbf16>
    %cst = arith.constant dense<0.000000e+00> : vector<256x64xf32>
    %2 = tpu.matmul %0, %1, %cst {dimension_numbers = #tpu.dot_dimension_numbers<[1], [0], [0], [1], [0, 0, 1, 1], [], []>} : vector<256x32xbf16>, vector<32x64xbf16>, vector<256x64xf32> -> vector<256x64xf32>
    %c0_3 = arith.constant 0 : index
    %c0_4 = arith.constant 0 : index
    %3 = vector.load %arg3[%c0_3, %c0_4] : memref<1x64xf32, #tpu.memory_space<vmem>>, vector<1x64xf32>
    %4 = vector.broadcast %3 : vector<1x64xf32> to vector<256x64xf32>
    %5 = arith.addf %2, %4 : vector<256x64xf32>
    %cst_5 = arith.constant 0.000000e+00 : f32
    %6 = vector.broadcast %cst_5 : f32 to vector<256x64xf32>
    %7 = arith.maximumf %5, %6 : vector<256x64xf32>
    %8 = arith.truncf %7 : vector<256x64xf32> to vector<256x64xbf16>
    %c0_6 = arith.constant 0 : index
    %c0_7 = arith.constant 0 : index
    %9 = vector.load %arg4[%c0_6, %c0_7] : memref<64x64xbf16, #tpu.memory_space<vmem>>, vector<64x64xbf16>
    %cst_8 = arith.constant dense<0.000000e+00> : vector<256x64xf32>
    %10 = tpu.matmul %8, %9, %cst_8 {dimension_numbers = #tpu.dot_dimension_numbers<[1], [0], [0], [1], [0, 0, 1, 1], [], []>} : vector<256x64xbf16>, vector<64x64xbf16>, vector<256x64xf32> -> vector<256x64xf32>
    %c0_9 = arith.constant 0 : index
    %c0_10 = arith.constant 0 : index
    %11 = vector.load %arg5[%c0_9, %c0_10] : memref<1x64xf32, #tpu.memory_space<vmem>>, vector<1x64xf32>
    %12 = vector.broadcast %11 : vector<1x64xf32> to vector<256x64xf32>
    %13 = arith.addf %10, %12 : vector<256x64xf32>
    %cst_11 = arith.constant 0.000000e+00 : f32
    %14 = vector.broadcast %cst_11 : f32 to vector<256x64xf32>
    %15 = arith.maximumf %13, %14 : vector<256x64xf32>
    %16 = arith.truncf %15 : vector<256x64xf32> to vector<256x64xbf16>
    %c0_12 = arith.constant 0 : index
    %c0_13 = arith.constant 0 : index
    %17 = vector.load %arg6[%c0_12, %c0_13] : memref<64x32xbf16, #tpu.memory_space<vmem>>, vector<64x32xbf16>
    %cst_14 = arith.constant dense<0.000000e+00> : vector<256x32xf32>
    %18 = tpu.matmul %16, %17, %cst_14 {dimension_numbers = #tpu.dot_dimension_numbers<[1], [0], [0], [1], [0, 0, 1, 1], [], []>} : vector<256x64xbf16>, vector<64x32xbf16>, vector<256x32xf32> -> vector<256x32xf32>
    %c0_15 = arith.constant 0 : index
    %c0_16 = arith.constant 0 : index
    %19 = vector.load %arg7[%c0_15, %c0_16] : memref<1x32xf32, #tpu.memory_space<vmem>>, vector<1x32xf32>
    %20 = vector.broadcast %19 : vector<1x32xf32> to vector<256x32xf32>
    %21 = arith.addf %18, %20 : vector<256x32xf32>
    %cst_17 = arith.constant 0.000000e+00 : f32
    %22 = vector.broadcast %cst_17 : f32 to vector<256x32xf32>
    %23 = arith.maximumf %21, %22 : vector<256x32xf32>
    %24 = arith.truncf %23 : vector<256x32xf32> to vector<256x32xbf16>
    %c0_18 = arith.constant 0 : index
    %c0_19 = arith.constant 0 : index
    %25 = vector.load %arg8[%c0_18, %c0_19] : memref<32x32xbf16, #tpu.memory_space<vmem>>, vector<32x32xbf16>
    %cst_20 = arith.constant dense<0.000000e+00> : vector<256x32xf32>
    %26 = tpu.matmul %24, %25, %cst_20 {dimension_numbers = #tpu.dot_dimension_numbers<[1], [0], [0], [1], [0, 0, 1, 1], [], []>} : vector<256x32xbf16>, vector<32x32xbf16>, vector<256x32xf32> -> vector<256x32xf32>
    %c0_21 = arith.constant 0 : index
    %c0_22 = arith.constant 0 : index
    %27 = vector.load %arg9[%c0_21, %c0_22] : memref<1x32xf32, #tpu.memory_space<vmem>>, vector<1x32xf32>
    %28 = vector.broadcast %27 : vector<1x32xf32> to vector<256x32xf32>
    %29 = arith.addf %26, %28 : vector<256x32xf32>
    %cst_23 = arith.constant 0.000000e+00 : f32
    %30 = vector.broadcast %cst_23 : f32 to vector<256x32xf32>
    %31 = arith.maximumf %29, %30 : vector<256x32xf32>
    %32 = arith.truncf %31 : vector<256x32xf32> to vector<256x32xbf16>
    %33 = arith.extf %32 : vector<256x32xbf16> to vector<256x32xf32>
    %c0_24 = arith.constant 0 : index
    %c0_25 = arith.constant 0 : index
    %34 = vector.load %arg10[%c0_24, %c0_25] : memref<1x32xf32, #tpu.memory_space<vmem>>, vector<1x32xf32>
    %35 = vector.broadcast %34 : vector<1x32xf32> to vector<256x32xf32>
    %36 = arith.mulf %33, %35 : vector<256x32xf32>
    %cst_26 = arith.constant dense<0.000000e+00> : vector<256xf32>
    %37 = vector.multi_reduction <add>, %36, %cst_26 [1] : vector<256x32xf32> to vector<256xf32>
    %38 = vector.shape_cast %37 : vector<256xf32> to vector<1x1x256xf32>
    %c0_27 = arith.constant 0 : index
    %c0_28 = arith.constant 0 : index
    %39 = vector.load %arg11[%c0_27, %c0_28] : memref<1x1xf32, #tpu.memory_space<vmem>>, vector<1x1xf32>
    %40 = vector.shape_cast %39 : vector<1x1xf32> to vector<1x1x1xf32>
    %41 = vector.broadcast %40 : vector<1x1x1xf32> to vector<1x1x256xf32>
    %42 = arith.addf %38, %41 : vector<1x1x256xf32>
    %c0_29 = arith.constant 0 : index
    %c0_30 = arith.constant 0 : index
    %c0_31 = arith.constant 0 : index
    %43 = vector.load %arg12[%c0_29, %c0_30, %c0_31] : memref<1x1x256xf32, #tpu.memory_space<vmem>>, vector<1x1x256xf32>
    tpu.vector_store %arg12[%c0_29, %c0_30, %c0_31], %42 {strides = array<i32>} : memref<1x1x256xf32, #tpu.memory_space<vmem>>, vector<1x1x256xf32>,
    return
  }
  func.func @transform_0(%arg0: i32) -> (i32, i32) {
    %c0_i32 = arith.constant 0 : i32
    %c0_i32_0 = arith.constant 0 : i32
    return %arg0, %c0_i32 : i32, i32
  }
  func.func @transform_1(%arg0: i32) -> (i32, i32) {
    %c0_i32 = arith.constant 0 : i32
    %c0_i32_0 = arith.constant 0 : i32
    %c0_i32_1 = arith.constant 0 : i32
    return %c0_i32, %c0_i32_0 : i32, i32
  }
  func.func @transform_2(%arg0: i32) -> (i32, i32) {
    %c0_i32 = arith.constant 0 : i32
    %c0_i32_0 = arith.constant 0 : i32
    %c0_i32_1 = arith.constant 0 : i32
    return %c0_i32, %c0_i32_0 : i32, i32
  }
  func.func @transform_3(%arg0: i32) -> (i32, i32) {
    %c0_i32 = arith.constant 0 : i32
    %c0_i32_0 = arith.constant 0 : i32
    %c0_i32_1 = arith.constant 0 : i32
    return %c0_i32, %c0_i32_0 : i32, i32
  }
  func.func @transform_4(%arg0: i32) -> (i32, i32) {
    %c0_i32 = arith.constant 0 : i32
    %c0_i32_0 = arith.constant 0 : i32
    %c0_i32_1 = arith.constant 0 : i32
    return %c0_i32, %c0_i32_0 : i32, i32
  }
  func.func @transform_5(%arg0: i32) -> (i32, i32) {
    %c0_i32 = arith.constant 0 : i32
    %c0_i32_0 = arith.constant 0 : i32
    %c0_i32_1 = arith.constant 0 : i32
    return %c0_i32, %c0_i32_0 : i32, i32
  }
  func.func @transform_6(%arg0: i32) -> (i32, i32) {
    %c0_i32 = arith.constant 0 : i32
    %c0_i32_0 = arith.constant 0 : i32
    %c0_i32_1 = arith.constant 0 : i32
    return %c0_i32, %c0_i32_0 : i32, i32
  }
  func.func @transform_7(%arg0: i32) -> (i32, i32) {
    %c0_i32 = arith.constant 0 : i32
    %c0_i32_0 = arith.constant 0 : i32
    %c0_i32_1 = arith.constant 0 : i32
    return %c0_i32, %c0_i32_0 : i32, i32
  }
  func.func @transform_8(%arg0: i32) -> (i32, i32) {
    %c0_i32 = arith.constant 0 : i32
    %c0_i32_0 = arith.constant 0 : i32
    %c0_i32_1 = arith.constant 0 : i32
    return %c0_i32, %c0_i32_0 : i32, i32
  }
  func.func @transform_9(%arg0: i32) -> (i32, i32) {
    %c0_i32 = arith.constant 0 : i32
    %c0_i32_0 = arith.constant 0 : i32
    %c0_i32_1 = arith.constant 0 : i32
    return %c0_i32, %c0_i32_0 : i32, i32
  }
  func.func @transform_10(%arg0: i32) -> (i32, i32) {
    %c0_i32 = arith.constant 0 : i32
    %c0_i32_0 = arith.constant 0 : i32
    %c0_i32_1 = arith.constant 0 : i32
    return %c0_i32, %c0_i32_0 : i32, i32
  }
  func.func @transform_11(%arg0: i32) -> (i32, i32, i32) {
    %c0_i32 = arith.constant 0 : i32
    %c0_i32_0 = arith.constant 0 : i32
    %c0_i32_1 = arith.constant 0 : i32
    return %arg0, %c0_i32, %c0_i32_0 : i32, i32, i32
  }
}

</mosaic_0001>

<bundles_post_ra>
// kernel: tpu_custom_call.1
= control target key start
LH: loop header
LB: loop body
LE: loop exit
PB: predicated region body
PF: predicated region fallthrough
CT: control target
= control target key end

     0   :  { %s6740_s0 = inlined_call_operand.vmem [shape: bf16[512,32], index: 0, kind: input, shape index: {}]   ;;  %s6741_s1 = inlined_call_operand.vmem [shape: bf16[32,64], index: 1, kind: input, shape index: {}]   ;;  %s6742_s2 = inlined_call_operand.vmem [shape: f32[1,64], index: 2, kind: input, shape index: {}]   ;;  %s6743_s3 = inlined_call_operand.vmem [shape: bf16[64,64], index: 3, kind: input, shape index: {}]   ;;  %s6744_s4 = inlined_call_operand.vmem [shape: f32[1,64], index: 4, kind: input, shape index: {}]   ;;  %s6745_s5 = inlined_call_operand.vmem [shape: bf16[64,32], index: 5, kind: input, shape index: {}]   ;;  %s6746_s6 = inlined_call_operand.vmem [shape: f32[1,32], index: 6, kind: input, shape index: {}]   ;;  %s6747_s7 = inlined_call_operand.vmem [shape: bf16[32,32], index: 7, kind: input, shape index: {}]   ;;  %s6748_s8 = inlined_call_operand.vmem [shape: f32[1,32], index: 8, kind: input, shape index: {}]   ;;  %s6749_s9 = inlined_call_operand.vmem [shape: f32[1,32], index: 9, kind: input, shape index: {}]   ;;  %s6750_s10 = inlined_call_operand.<no memory space> [shape: f32[1,1], index: 10, kind: input, shape index: {}]   ;;  %s6751_s11 = inlined_call_operand.hbm [shape: f32[2,1,256], index: 11, kind: output, shape index: {}]  }
   0x1   :  { %v16_v0 = vstv %s6750_s10 }
   0x2   :  { %17 = vst [vmem:[#allocation2] sm:$0x1] %v16_v0 }
   0x3   :  { %18 = vsyncpa [#allocation4], 0 }
   0x4   :  { %20 = vsyncpa [#allocation4 + $0x1], 0  ;;  %s5409_s19 = smov 0   ;;  %s5411_s20 = smov 0  }
   0x5   :  { %s5413_s21 = smov 0   ;;  %s5415_s22 = smov 0  }
   0x6 LB: > { %s4869_s10 = sadd.s32 4294967295, %s5341_s22   ;;  %s4870_s23 = sadd.s32 4294967294, %s5341_s22   ;;  %s5341_s22 = sphi %s5415_s22, %s6757_s22   ;;  %s5337_s21 = sphi %s5413_s21, %s6756_s21   ;;  %s5333_s20 = sphi %s5411_s20, %s6755_s20   ;;  %s5329_s19 = sphi %s5409_s19, %s6754_s19  }
   0x7   : > { %s5432_s24 = sadd.s32 1, %s5341_s22   ;;  %s269_s25 = sadd.s32 1, %s5337_s21 }
   0x8   : > { %s266_s26 = ssub.s32 %s5341_s22, %s5432_s24  ;;  %p279_p0 = scmp.ne.s32.totalorder %s5337_s21, %s5333_s20 }
   0x9   : > { %p267_p1 = scmp.eq.s32.totalorder %s266_s26, 0  ;;  %p280_p2 = scmp.eq.s32.totalorder %s4869_s10, 1 }
   0xa   : > { %p285_p3 = scmp.ne.s32.totalorder %s5333_s20, %s5329_s19  ;;  %p286_p4 = scmp.eq.s32.totalorder %s4870_s23, 1 }
   0xb   : > { %s5442_s27 = scalar_select %p267_p1, %s5337_s21, %s269_s25  }
   0xc   : > { %p5444_p5 = por %p280_p2, %p279_p0  ;;  %p5448_p6 = por %p286_p4, %p285_p3 }
   0xd   : > { %p4873_p7 = scmp.ge.s32.totalorder %s5341_s22, 1  ;;  %p343_p8 = scmp.lt.s32.totalorder %s5341_s22, 3 }
   0xf   : > { %p344_p9 = pnand %p4873_p7, %p343_p8 }
  0x10   : > { %v5251_v1 = vld [vmem:[%s6741_s1] sm:$0xff] (!%p344_p9)   ;;  %s5457_s13 = sshll.u32 (!%p344_p9), %s4869_s10, 5  ;;  %v5252_v2 = vld [vmem:[%s6741_s1 + $0x8] sm:$0xff] (!%p344_p9)   ;;  %vm525_vm0 = vcmask (!%p344_p9), 261120   ;;  %v5271_v21 = vld [vmem:[%s6743_s3 + $0x10] sm:$0xff] (!%p344_p9)   ;;  %vm822_vm1 = vcmask (!%p344_p9), 523264  }
  0x11   : > { %347 = sbr.rel (%p344_p9) target bundleno = 1399 (0x577), region = 64  ;;  %p384_p10 = scmp.lt.s32.totalorder (!%p344_p9), %s5457_s13, 63  ;;  %5056 = vmatprep.subr.bf16.mxu0 (!%p344_p9), %v5251_v1  ;;  %v5269_v3 = vld [vmem:[%s6743_s3] sm:$0xff] (!%p344_p9)   ;;  %v5270_v4 = vld [vmem:[%s6743_s3 + $0x8] sm:$0xff] (!%p344_p9)   ;;  %v5272_v22 = vld [vmem:[%s6743_s3 + $0x18] sm:$0xff] (!%p344_p9)   ;;  %vm4596_vm2 = vcmask (!%p344_p9), 130112  }
  0x12   : > { %5057 = vmatpush3.bf16.msra.mxu0 (!%p344_p9), %v5251_v1  ;;  %5092 = vmatprep.subr.bf16.mxu1 (!%p344_p9), %v5269_v3  ;;  %v5273_v23 = vld [vmem:[%s6745_s5] sm:$0xff] (!%p344_p9)   ;;  %v5274_v24 = vld [vmem:[%s6745_s5 + $0x8] sm:$0xff] (!%p344_p9)   ;;  %v5275_v25 = vld [vmem:[%s6745_s5 + $0x10] sm:$0xff] (!%p344_p9)   ;;  %vm4603_vm3 = vcmask (!%p344_p9), 195712   ;;  %vm4610_vm4 = vcmask (!%p344_p9), 261312   ;;  %vm4617_vm5 = vcmask (!%p344_p9), 326912  }
  0x13   : > { %5058 = vmatprep.subr.bf16.mxu0 (!%p344_p9), %v5252_v2  ;;  %5093 = vmatpush3.bf16.msra.mxu1 (!%p344_p9), %v5269_v3  ;;  %v5276_v26 = vld [vmem:[%s6745_s5 + $0x18] sm:$0xff] (!%p344_p9)   ;;  %v5528_v27 = vld [vmem:[%s6742_s2] ss:$0 sm:$0xff] (!%p344_p9)  ;;  %vm4624_vm6 = vcmask (!%p344_p9), 392512   ;;  %vm4631_vm7 = vcmask (!%p344_p9), 458112   ;;  %vm4638_vm8 = vcmask (!%p344_p9), 523712  }
  0x14   : > { %5094 = vmatprep.subr.bf16.mxu1 (!%p344_p9), %v5270_v4  ;;  %vm4645_vm9 = vcmask (!%p344_p9), 589312   ;;  %vm4652_vm10 = vcmask (!%p344_p9), 654912   ;;  %vm4659_vm11 = vcmask (!%p344_p9), 720512   ;;  %vm4666_vm12 = vcmask (!%p344_p9), 786112   ;;  %s5345_s16 = smov (!%p344_p9), [#allocation3]  }
  0x15   : > { %vm4673_vm13 = vcmask (!%p344_p9), 851712   ;;  %vm4680_vm14 = vcmask (!%p344_p9), 917312   ;;  %vm4687_vm15 = vcmask (!%p344_p9), 982912   ;;  %s5283_s17 = sshll.u32 (!%p344_p9), %s5345_s16, 4  ;;  %s5284_s17 = int_to_ptr.vmem [resolvable:$false] %s5283_s17 }
  0x16   : > { %5059 = vmatpush3.bf16.msra.mxu0 (!%p344_p9), %v5252_v2 }
  0x17   : > { %5095 = vmatpush3.bf16.msra.mxu1 (!%p344_p9), %v5270_v4  ;;  %5132 = vmatprep.subr.bf16.mxu0 (!%p344_p9), %v5273_v23 }
  0x18   : > { %s385_s18 = scalar_select %p384_p10, %s5457_s13, 63  ;;  %5096 = vmatprep.subr.bf16.mxu1 %v5271_v21 }
  0x1a   : > { %s4876_s10 = sshll.u32 %s385_s18, 2  ;;  %s380_s18 = sand.u32 1, %s5333_s20  }
  0x1b   : > { %s5473_s12 = scalar_lea.vmem %s6740_s0, %s4876_s10  ;;  %5097 = vmatpush3.bf16.msra.mxu1 %v5271_v21  ;;  %s4874_s23 = sshll.u32 %s380_s18, 1 }
  0x1c   : > { %v5253_v5 = vld [vmem:[%s5473_s12] sm:$0xff]   ;;  %v5254_v6 = vld [vmem:[%s5473_s12 + $0x8] sm:$0xff]   ;;  %v5255_v7 = vld [vmem:[%s5473_s12 + $0x10] sm:$0xff]   ;;  %5098 = vmatprep.subr.bf16.mxu1 %v5272_v22  ;;  %s382_s25 = scalar_lea.vmem [#allocation3], %s4874_s23  ;;  %s4797_s14 = scalar_lea.sflag [#allocation4], %s380_s18 }
  0x1d   : > { %5060 = vmatprep.mubr.msk.bf16.mxu0 %vm525_vm0, %v5253_v5  ;;  %v5256_v8 = vld [vmem:[%s5473_s12 + $0x18] sm:$0xff]   ;;  %v5257_v9 = vld [vmem:[%s5473_s12 + $0x20] sm:$0xff]   ;;  %v5258_v10 = vld [vmem:[%s5473_s12 + $0x28] sm:$0xff]   ;;  %s4811_s10 = sshll.u32 %s382_s25, 4  ;;  %s5285_s23 = scalar_lea.vmem %s5284_s17, 64  ;;  %s6698_s10 = int_to_ptr.vmem [resolvable:$true] %s4811_s10 }
  0x1e   : > { %5061 = vmatmul.mubr.msk.bf16.vlgmr.msra.gmra.mrb[0].mxu0 %vm525_vm0, %v5254_v6  ;;  %v5259_v11 = vld [vmem:[%s5473_s12 + $0x30] sm:$0xff]   ;;  %v5260_v12 = vld [vmem:[%s5473_s12 + $0x38] sm:$0xff]   ;;  %v5261_v13 = vld [vmem:[%s5473_s12 + $0x40] sm:$0xff]   ;;  %s5279_s15 = scalar_lea.vmem %s6698_s10, 32  ;;  %p5286_p0 = scmp.lt.s32.totalorder %s6698_s10, %s5284_s17 }
  0x1f   : > { %5064 = vmatprep.mubr.msk.bf16.mxu0 %vm525_vm0, %v5255_v7  ;;  %v5262_v14 = vld [vmem:[%s5473_s12 + $0x48] sm:$0xff]   ;;  %v5263_v15 = vld [vmem:[%s5473_s12 + $0x50] sm:$0xff]   ;;  %v5264_v16 = vld [vmem:[%s5473_s12 + $0x58] sm:$0xff]   ;;  %5099 = vmatpush3.bf16.msra.mxu1 %v5272_v22  ;;  %p5280_p11 = scmp.ne.s32.totalorder %s6698_s10, %s5279_s15  ;;  %p5287_p1 = scmp.lt.s32.totalorder %s5285_s23, %s5279_s15 }
  0x20   : > { %v5265_v17 = vld [vmem:[%s5473_s12 + $0x60] sm:$0xff]   ;;  %v5266_v18 = vld [vmem:[%s5473_s12 + $0x68] sm:$0xff]   ;;  %v5267_v19 = vld [vmem:[%s5473_s12 + $0x70] sm:$0xff]   ;;  %5133 = vmatpush3.bf16.msra.mxu0 %v5273_v23 }
  0x21   : > { %v5268_v20 = vld [vmem:[%s5473_s12 + $0x78] sm:$0xff]   ;;  %5134 = vmatprep.subr.bf16.mxu0 %v5274_v24  ;;  %s6696_s12 = scalar_lea.hbm %s6751_s11, %s5457_s13  ;;  %p5281_p12 = pnand %p5280_p11, %p5444_p5 }
  0x22   : > { %p5288_p2 = por %p5287_p1, %p5286_p0 }
  0x23   : > { %p5282_p13 = pneg %p5281_p12 }
  0x24   : > { %5135 = vmatpush3.bf16.msra.mxu0 %v5274_v24 }
  0x25   : > { %5136 = vmatprep.subr.bf16.mxu0 %v5275_v25  ;;  %p5289_p3 = pnand %p5288_p2, %p5282_p13 }
  0x26   : > { %5065 = vmatmul.mubr.msk.bf16.gmra.mrb[4].mxu0 %vm525_vm0, %v5256_v8 }
  0x27   : > { %5068 = vmatprep.mubr.msk.bf16.mxu0 %vm525_vm0, %v5257_v9 }
  0x28   : > { %5137 = vmatpush3.bf16.msra.mxu0 %v5275_v25 }
  0x29   : > { %5138 = vmatprep.subr.bf16.mxu0 %v5276_v26 }
  0x2c   : > { %5139 = vmatpush3.bf16.msra.mxu0 %v5276_v26 }
  0x2e   : > { %5069 = vmatmul.mubr.msk.bf16.gmra.mrb[8].mxu0 %vm525_vm0, %v5258_v10 }
  0x2f   : > { %5072 = vmatprep.mubr.msk.bf16.mxu0 %vm525_vm0, %v5259_v11 }
  0x36   : > { %5073 = vmatmul.mubr.msk.bf16.gmra.mrb[12].mxu0 %vm525_vm0, %v5260_v12 }
  0x37   : > { %5076 = vmatprep.mubr.msk.bf16.mxu0 %vm525_vm0, %v5261_v13 }
  0x3e   : > { %5077 = vmatmul.mubr.msk.bf16.gmra.mrb[16].mxu0 %vm525_vm0, %v5262_v14 }
  0x3f   : > { %5080 = vmatprep.mubr.msk.bf16.mxu0 %vm525_vm0, %v5263_v15 }
  0x46   : > { %5081 = vmatmul.mubr.msk.bf16.gmra.mrb[20].mxu0 %vm525_vm0, %v5264_v16 }
  0x47   : > { %5084 = vmatprep.mubr.msk.bf16.mxu0 %vm525_vm0, %v5265_v17 }
  0x4e   : > { %5085 = vmatmul.mubr.msk.bf16.gmra.mrb[24].mxu0 %vm525_vm0, %v5266_v18 }
  0x4f   : > { %5088 = vmatprep.mubr.msk.bf16.mxu0 %vm525_vm0, %v5267_v19 }
  0x56   : > { %5089 = vmatmul.mubr.msk.bf16.gmra.mrb[28].mxu0 %vm525_vm0, %v5268_v20 }
  0xf1   : > { %v5062_v28 = vpop.f32.mrb[0].mxu0 }
  0xf2   : > { %v617_v29 = vadd.f32 %v5062_v28, %v5528_v27  ;;  %v608_v30 = vpop.f32.mrb[1].mxu0 }
  0xf3   : > { %v609_v31 = vadd.f32 %v5528_v27, %v608_v30  ;;  %v5063_v32 = vpop.f32.mrb[2].mxu0 }
  0xf4   : > { %v620_v33 = vadd.f32 %v5063_v32, %v5528_v27  ;;  %v611_v34 = vpop.f32.mrb[3].mxu0  ;;  %v737_v36 = vmax.f32 %v617_v29, 0.0 }
  0xf5   : > { %v612_v35 = vadd.f32 %v5528_v27, %v611_v34  ;;  %v735_v38 = vmax.f32 %v609_v31, 0.0 }
  0xf6   : > { %v738_v37 = vmax.f32 %v620_v33, 0.0 }
  0xf7   : > { %v736_v39 = vmax.f32 %v612_v35, 0.0 }
  0xf8   : > { %v768_v40 = vpack.c.bf16 %v738_v37, %v737_v36 }
  0xf9   : > { %v5066_v41 = vpop.f32.mrb[4].mxu0  ;;  %v767_v42 = vpack.c.bf16 %v736_v39, %v735_v38 }
  0xfa   : > { %v633_v43 = vadd.f32 %v5066_v41, %v5528_v27  ;;  %v624_v44 = vpop.f32.mrb[5].mxu0 }
  0xfb   : > { %v625_v45 = vadd.f32 %v5528_v27, %v624_v44  ;;  %v5067_v46 = vpop.f32.mrb[6].mxu0  ;;  %5100 = vmatprep.mubr.msk.bf16.mxu1 %vm822_vm1, %v767_v42 }
  0xfc   : > { %v741_v47 = vmax.f32 %v633_v43, 0.0  ;;  %v636_v48 = vadd.f32 %v5067_v46, %v5528_v27  ;;  %v627_v49 = vpop.f32.mrb[7].mxu0  ;;  %5101 = vmatmul.mubr.msk.bf16.vlgmr.msra.gmra.mrb[0].mxu1 %vm822_vm1, %v768_v40 }
  0xfd   : > { %v628_v50 = vadd.f32 %v5528_v27, %v627_v49  ;;  %v739_v52 = vmax.f32 %v625_v45, 0.0 }
  0xfe   : > { %v742_v51 = vmax.f32 %v636_v48, 0.0 }
  0xff   : > { %v740_v53 = vmax.f32 %v628_v50, 0.0 }
 0x100   : > { %v770_v54 = vpack.c.bf16 %v742_v51, %v741_v47 }
 0x101   : > { %v769_v55 = vpack.c.bf16 %v740_v53, %v739_v52  ;;  %v5070_v56 = vpop.f32.mrb[8].mxu0 }
 0x102   : > { %v649_v57 = vadd.f32 %v5070_v56, %v5528_v27  ;;  %v640_v58 = vpop.f32.mrb[9].mxu0 }
 0x103   : > { %v641_v59 = vadd.f32 %v5528_v27, %v640_v58  ;;  %v5071_v60 = vpop.f32.mrb[10].mxu0  ;;  %5104 = vmatprep.mubr.msk.bf16.mxu1 %vm822_vm1, %v769_v55 }
 0x104   : > { %v745_v61 = vmax.f32 %v649_v57, 0.0  ;;  %v652_v62 = vadd.f32 %v5071_v60, %v5528_v27  ;;  %v643_v63 = vpop.f32.mrb[11].mxu0  ;;  %5105 = vmatmul.mubr.msk.bf16.gmra.mrb[4].mxu1 %vm822_vm1, %v770_v54 }
 0x105   : > { %v644_v0 = vadd.f32 %v5528_v27, %v643_v63  ;;  %v743_v2 = vmax.f32 %v641_v59, 0.0 }
 0x106   : > { %v746_v1 = vmax.f32 %v652_v62, 0.0 }
 0x107   : > { %v744_v3 = vmax.f32 %v644_v0, 0.0 }
 0x108   : > { %v772_v4 = vpack.c.bf16 %v746_v1, %v745_v61 }
 0x109   : > { %v771_v5 = vpack.c.bf16 %v744_v3, %v743_v2  ;;  %v5074_v6 = vpop.f32.mrb[12].mxu0 }
 0x10a   : > { %v665_v7 = vadd.f32 %v5074_v6, %v5528_v27  ;;  %v656_v8 = vpop.f32.mrb[13].mxu0 }
 0x10b   : > { %v657_v9 = vadd.f32 %v5528_v27, %v656_v8  ;;  %v5075_v10 = vpop.f32.mrb[14].mxu0  ;;  %5108 = vmatprep.mubr.msk.bf16.mxu1 %vm822_vm1, %v771_v5 }
 0x10c   : > { %v749_v11 = vmax.f32 %v665_v7, 0.0  ;;  %v668_v12 = vadd.f32 %v5075_v10, %v5528_v27  ;;  %v659_v13 = vpop.f32.mrb[15].mxu0  ;;  %5109 = vmatmul.mubr.msk.bf16.gmra.mrb[8].mxu1 %vm822_vm1, %v772_v4 }
 0x10d   : > { %v660_v14 = vadd.f32 %v5528_v27, %v659_v13  ;;  %v747_v16 = vmax.f32 %v657_v9, 0.0  ;;  %v5277_v13 = vld [vmem:[%s6747_s7] sm:$0xff]  }
 0x10e   : > { %v750_v15 = vmax.f32 %v668_v12, 0.0  ;;  %5172 = vmatprep.subr.bf16.mxu1 %v5277_v13 }
 0x10f   : > { %v748_v17 = vmax.f32 %v660_v14, 0.0  ;;  %v5278_v14 = vld [vmem:[%s6747_s7 + $0x8] sm:$0xff]   ;;  %5173 = vmatpush3.bf16.msra.mxu1 %v5277_v13 }
 0x110   : > { %v774_v18 = vpack.c.bf16 %v750_v15, %v749_v11  ;;  %5174 = vmatprep.subr.bf16.mxu1 %v5278_v14 }
 0x111   : > { %v773_v19 = vpack.c.bf16 %v748_v17, %v747_v16  ;;  %v5078_v20 = vpop.f32.mrb[16].mxu0 }
 0x112   : > { %v681_v21 = vadd.f32 %v5078_v20, %v5528_v27  ;;  %v672_v22 = vpop.f32.mrb[17].mxu0 }
 0x113   : > { %v673_v23 = vadd.f32 %v5528_v27, %v672_v22  ;;  %v5079_v24 = vpop.f32.mrb[18].mxu0  ;;  %5112 = vmatprep.mubr.msk.bf16.mxu1 %vm822_vm1, %v773_v19  ;;  %5175 = vmatpush3.bf16.msra.mxu1 %v5278_v14 }
 0x114   : > { %v753_v25 = vmax.f32 %v681_v21, 0.0  ;;  %v684_v26 = vadd.f32 %v5079_v24, %v5528_v27  ;;  %v675_v28 = vpop.f32.mrb[19].mxu0  ;;  %5113 = vmatmul.mubr.msk.bf16.gmra.mrb[12].mxu1 %vm822_vm1, %v774_v18 }
 0x115   : > { %v676_v29 = vadd.f32 %v5528_v27, %v675_v28  ;;  %v751_v31 = vmax.f32 %v673_v23, 0.0 }
 0x116   : > { %v754_v30 = vmax.f32 %v684_v26, 0.0 }
 0x117   : > { %v752_v32 = vmax.f32 %v676_v29, 0.0 }
 0x118   : > { %v776_v33 = vpack.c.bf16 %v754_v30, %v753_v25 }
 0x119   : > { %v775_v34 = vpack.c.bf16 %v752_v32, %v751_v31  ;;  %v5082_v35 = vpop.f32.mrb[20].mxu0 }
 0x11a   : > { %v697_v36 = vadd.f32 %v5082_v35, %v5528_v27  ;;  %v688_v37 = vpop.f32.mrb[21].mxu0 }
 0x11b   : > { %v689_v38 = vadd.f32 %v5528_v27, %v688_v37  ;;  %v5083_v39 = vpop.f32.mrb[22].mxu0  ;;  %5116 = vmatprep.mubr.msk.bf16.mxu1 %vm822_vm1, %v775_v34 }
 0x11c   : > { %v757_v40 = vmax.f32 %v697_v36, 0.0  ;;  %v700_v41 = vadd.f32 %v5083_v39, %v5528_v27  ;;  %v691_v42 = vpop.f32.mrb[23].mxu0  ;;  %5117 = vmatmul.mubr.msk.bf16.gmra.mrb[16].mxu1 %vm822_vm1, %v776_v33 }
 0x11d   : > { %v692_v43 = vadd.f32 %v5528_v27, %v691_v42  ;;  %v755_v45 = vmax.f32 %v689_v38, 0.0 }
 0x11e   : > { %v758_v44 = vmax.f32 %v700_v41, 0.0 }
 0x11f   : > { %v756_v46 = vmax.f32 %v692_v43, 0.0 }
 0x120   : > { %v778_v47 = vpack.c.bf16 %v758_v44, %v757_v40 }
 0x121   : > { %v777_v48 = vpack.c.bf16 %v756_v46, %v755_v45  ;;  %v5086_v49 = vpop.f32.mrb[24].mxu0 }
 0x122   : > { %v713_v50 = vadd.f32 %v5086_v49, %v5528_v27  ;;  %v704_v51 = vpop.f32.mrb[25].mxu0 }
 0x123   : > { %v705_v52 = vadd.f32 %v5528_v27, %v704_v51  ;;  %v5087_v53 = vpop.f32.mrb[26].mxu0  ;;  %5120 = vmatprep.mubr.msk.bf16.mxu1 %vm822_vm1, %v777_v48 }
 0x124   : > { %v761_v54 = vmax.f32 %v713_v50, 0.0  ;;  %v716_v55 = vadd.f32 %v5087_v53, %v5528_v27  ;;  %v707_v56 = vpop.f32.mrb[27].mxu0  ;;  %5121 = vmatmul.mubr.msk.bf16.gmra.mrb[20].mxu1 %vm822_vm1, %v778_v47 }
 0x125   : > { %v759_v57 = vmax.f32 %v705_v52, 0.0  ;;  %v708_v58 = vadd.f32 %v5528_v27, %v707_v56 }
 0x126   : > { %v762_v59 = vmax.f32 %v716_v55, 0.0 }
 0x127   : > { %v760_v60 = vmax.f32 %v708_v58, 0.0 }
 0x128   : > { %v780_v61 = vpack.c.bf16 %v762_v59, %v761_v54 }
 0x129   : > { %v779_v62 = vpack.c.bf16 %v760_v60, %v759_v57  ;;  %v5090_v63 = vpop.f32.mrb[28].mxu0 }
 0x12a   : > { %v729_v0 = vadd.f32 %v5090_v63, %v5528_v27  ;;  %v720_v1 = vpop.f32.mrb[29].mxu0 }
 0x12b   : > { %5124 = vmatprep.mubr.msk.bf16.mxu1 %vm822_vm1, %v779_v62  ;;  %v721_v2 = vadd.f32 %v5528_v27, %v720_v1  ;;  %v5091_v3 = vpop.f32.mrb[30].mxu0 }
 0x12c   : > { %v765_v4 = vmax.f32 %v729_v0, 0.0  ;;  %5125 = vmatmul.mubr.msk.bf16.gmra.mrb[24].mxu1 %vm822_vm1, %v780_v61  ;;  %v732_v5 = vadd.f32 %v5091_v3, %v5528_v27  ;;  %v723_v6 = vpop.f32.mrb[31].mxu0 }
 0x12d   : > { %v763_v7 = vmax.f32 %v721_v2, 0.0  ;;  %v724_v8 = vadd.f32 %v5528_v27, %v723_v6  ;;  %v5587_v27 = vld [vmem:[%s6744_s4] ss:$0 sm:$0xff] }
 0x12e   : > { %v766_v9 = vmax.f32 %v732_v5, 0.0 }
 0x12f   : > { %v764_v10 = vmax.f32 %v724_v8, 0.0 }
 0x130   : > { %v782_v11 = vpack.c.bf16 %v766_v9, %v765_v4 }
 0x131   : > { %v781_v12 = vpack.c.bf16 %v764_v10, %v763_v7 }
 0x133   : > { %5128 = vmatprep.mubr.msk.bf16.mxu1 %vm822_vm1, %v781_v12 }
 0x134   : > { %5129 = vmatmul.mubr.msk.bf16.gmra.mrb[28].mxu1 %vm822_vm1, %v782_v11 }
 0x1cf   : > { %v5102_v15 = vpop.f32.mrb[0].mxu1 }
 0x1d0   : > { %v914_v16 = vadd.f32 %v5102_v15, %v5587_v27  ;;  %v905_v17 = vpop.f32.mrb[1].mxu1 }
 0x1d1   : > { %v906_v18 = vadd.f32 %v5587_v27, %v905_v17  ;;  %v5103_v19 = vpop.f32.mrb[2].mxu1 }
 0x1d2   : > { %v917_v20 = vadd.f32 %v5103_v19, %v5587_v27  ;;  %v908_v21 = vpop.f32.mrb[3].mxu1  ;;  %v1034_v23 = vmax.f32 %v914_v16, 0.0 }
 0x1d3   : > { %v909_v22 = vadd.f32 %v5587_v27, %v908_v21  ;;  %v1032_v25 = vmax.f32 %v906_v18, 0.0 }
 0x1d4   : > { %v1035_v24 = vmax.f32 %v917_v20, 0.0 }
 0x1d5   : > { %v1033_v26 = vmax.f32 %v909_v22, 0.0 }
 0x1d6   : > { %v1065_v28 = vpack.c.bf16 %v1035_v24, %v1034_v23 }
 0x1d7   : > { %v1064_v29 = vpack.c.bf16 %v1033_v26, %v1032_v25  ;;  %v5106_v30 = vpop.f32.mrb[4].mxu1 }
 0x1d8   : > { %v930_v31 = vadd.f32 %v5106_v30, %v5587_v27  ;;  %v921_v32 = vpop.f32.mrb[5].mxu1 }
 0x1d9   : > { %v922_v33 = vadd.f32 %v5587_v27, %v921_v32  ;;  %v5107_v34 = vpop.f32.mrb[6].mxu1  ;;  %5140 = vmatprep.mubr.msk.bf16.mxu0 %vm822_vm1, %v1064_v29 }
 0x1da   : > { %v933_v35 = vadd.f32 %v5107_v34, %v5587_v27  ;;  %v924_v36 = vpop.f32.mrb[7].mxu1  ;;  %5141 = vmatmul.mubr.msk.bf16.vlgmr.msra.gmra.mrb[32].mxu0 %vm822_vm1, %v1065_v28  ;;  %v1038_v38 = vmax.f32 %v930_v31, 0.0 }
 0x1db   : > { %v925_v37 = vadd.f32 %v5587_v27, %v924_v36  ;;  %v1036_v40 = vmax.f32 %v922_v33, 0.0 }
 0x1dc   : > { %v1039_v39 = vmax.f32 %v933_v35, 0.0 }
 0x1dd   : > { %v1037_v41 = vmax.f32 %v925_v37, 0.0 }
 0x1de   : > { %v1067_v42 = vpack.c.bf16 %v1039_v39, %v1038_v38 }
 0x1df   : > { %v1066_v43 = vpack.c.bf16 %v1037_v41, %v1036_v40  ;;  %v5110_v44 = vpop.f32.mrb[8].mxu1 }
 0x1e0   : > { %v946_v45 = vadd.f32 %v5110_v44, %v5587_v27  ;;  %v937_v46 = vpop.f32.mrb[9].mxu1 }
 0x1e1   : > { %v938_v47 = vadd.f32 %v5587_v27, %v937_v46  ;;  %v5111_v48 = vpop.f32.mrb[10].mxu1  ;;  %5144 = vmatprep.mubr.msk.bf16.mxu0 %vm822_vm1, %v1066_v43 }
 0x1e2   : > { %v949_v49 = vadd.f32 %v5111_v48, %v5587_v27  ;;  %v940_v50 = vpop.f32.mrb[11].mxu1  ;;  %5145 = vmatmul.mubr.msk.bf16.gmra.mrb[36].mxu0 %vm822_vm1, %v1067_v42  ;;  %v1042_v52 = vmax.f32 %v946_v45, 0.0 }
 0x1e3   : > { %v941_v51 = vadd.f32 %v5587_v27, %v940_v50  ;;  %v1040_v54 = vmax.f32 %v938_v47, 0.0 }
 0x1e4   : > { %v1043_v53 = vmax.f32 %v949_v49, 0.0 }
 0x1e5   : > { %v1041_v55 = vmax.f32 %v941_v51, 0.0 }
 0x1e6   : > { %v1069_v56 = vpack.c.bf16 %v1043_v53, %v1042_v52 }
 0x1e7   : > { %v1068_v57 = vpack.c.bf16 %v1041_v55, %v1040_v54  ;;  %v5114_v58 = vpop.f32.mrb[12].mxu1 }
 0x1e8   : > { %v962_v59 = vadd.f32 %v5114_v58, %v5587_v27  ;;  %v953_v60 = vpop.f32.mrb[13].mxu1 }
 0x1e9   : > { %v954_v61 = vadd.f32 %v5587_v27, %v953_v60  ;;  %v5115_v62 = vpop.f32.mrb[14].mxu1  ;;  %5148 = vmatprep.mubr.msk.bf16.mxu0 %vm822_vm1, %v1068_v57 }
 0x1ea   : > { %v965_v63 = vadd.f32 %v5115_v62, %v5587_v27  ;;  %v956_v0 = vpop.f32.mrb[15].mxu1  ;;  %5149 = vmatmul.mubr.msk.bf16.gmra.mrb[40].mxu0 %vm822_vm1, %v1069_v56  ;;  %v1046_v2 = vmax.f32 %v962_v59, 0.0 }
 0x1eb   : > { %v957_v1 = vadd.f32 %v5587_v27, %v956_v0  ;;  %v1044_v4 = vmax.f32 %v954_v61, 0.0 }
 0x1ec   : > { %v1047_v3 = vmax.f32 %v965_v63, 0.0 }
 0x1ed   : > { %v1045_v5 = vmax.f32 %v957_v1, 0.0  ;;  %v1823_v1 = vld [vmem:[#allocation2] sm:$0x1] }
 0x1ee   : > { %v1071_v6 = vpack.c.bf16 %v1047_v3, %v1046_v2  ;;  %v5343_v2 = vmov 0   ;;  %v5640_v3 = vld [vmem:[%s6746_s6] ss:$0 sm:$0xff] }
 0x1ef   : > { %v1070_v7 = vpack.c.bf16 %v1045_v5, %v1044_v4  ;;  %v5118_v8 = vpop.f32.mrb[16].mxu1  ;;  %5249 = vset.pattern.permute.xlu1 %v5343_v2  ;;  %5250 = vset.pattern.permute.xlu0 %v5343_v2 }
 0x1f0   : > { %v978_v9 = vadd.f32 %v5118_v8, %v5587_v27  ;;  %v969_v10 = vpop.f32.mrb[17].mxu1  ;;  %1826 = vperm.xlu1 %5249, %v1823_v1  }
 0x1f1   : > { %v970_v11 = vadd.f32 %v5587_v27, %v969_v10  ;;  %v5119_v12 = vpop.f32.mrb[18].mxu1  ;;  %5152 = vmatprep.mubr.msk.bf16.mxu0 %vm822_vm1, %v1070_v7 }
 0x1f2   : > { %v981_v13 = vadd.f32 %v5119_v12, %v5587_v27  ;;  %v972_v14 = vpop.f32.mrb[19].mxu1  ;;  %5153 = vmatmul.mubr.msk.bf16.gmra.mrb[44].mxu0 %vm822_vm1, %v1071_v6  ;;  %v1050_v16 = vmax.f32 %v978_v9, 0.0 }
 0x1f3   : > { %v973_v15 = vadd.f32 %v5587_v27, %v972_v14  ;;  %v1048_v18 = vmax.f32 %v970_v11, 0.0 }
 0x1f4   : > { %v1051_v17 = vmax.f32 %v981_v13, 0.0 }
 0x1f5   : > { %v1049_v19 = vmax.f32 %v973_v15, 0.0 }
 0x1f6   : > { %v1073_v20 = vpack.c.bf16 %v1051_v17, %v1050_v16 }
 0x1f7   : > { %v1072_v21 = vpack.c.bf16 %v1049_v19, %v1048_v18  ;;  %v5122_v22 = vpop.f32.mrb[20].mxu1 }
 0x1f8   : > { %v994_v23 = vadd.f32 %v5122_v22, %v5587_v27  ;;  %v985_v24 = vpop.f32.mrb[21].mxu1 }
 0x1f9   : > { %v986_v25 = vadd.f32 %v5587_v27, %v985_v24  ;;  %v5123_v26 = vpop.f32.mrb[22].mxu1  ;;  %5156 = vmatprep.mubr.msk.bf16.mxu0 %vm822_vm1, %v1072_v21 }
 0x1fa   : > { %v997_v28 = vadd.f32 %v5123_v26, %v5587_v27  ;;  %v988_v29 = vpop.f32.mrb[23].mxu1  ;;  %5157 = vmatmul.mubr.msk.bf16.gmra.mrb[48].mxu0 %vm822_vm1, %v1073_v20  ;;  %v1054_v31 = vmax.f32 %v994_v23, 0.0 }
 0x1fb   : > { %v989_v30 = vadd.f32 %v5587_v27, %v988_v29  ;;  %v1052_v33 = vmax.f32 %v986_v25, 0.0 }
 0x1fc   : > { %v1055_v32 = vmax.f32 %v997_v28, 0.0 }
 0x1fd   : > { %v1053_v34 = vmax.f32 %v989_v30, 0.0 }
 0x1fe   : > { %v1075_v35 = vpack.c.bf16 %v1055_v32, %v1054_v31 }
 0x1ff   : > { %v1074_v36 = vpack.c.bf16 %v1053_v34, %v1052_v33  ;;  %v5126_v37 = vpop.f32.mrb[24].mxu1 }
 0x200   : > { %v1010_v38 = vadd.f32 %v5126_v37, %v5587_v27  ;;  %v1001_v39 = vpop.f32.mrb[25].mxu1 }
 0x201   : > { %v1002_v40 = vadd.f32 %v5587_v27, %v1001_v39  ;;  %v5127_v41 = vpop.f32.mrb[26].mxu1  ;;  %5160 = vmatprep.mubr.msk.bf16.mxu0 %vm822_vm1, %v1074_v36 }
 0x202   : > { %v1058_v42 = vmax.f32 %v1010_v38, 0.0  ;;  %v1013_v43 = vadd.f32 %v5127_v41, %v5587_v27  ;;  %v1004_v44 = vpop.f32.mrb[27].mxu1  ;;  %5161 = vmatmul.mubr.msk.bf16.gmra.mrb[52].mxu0 %vm822_vm1, %v1075_v35 }
 0x203   : > { %v1056_v45 = vmax.f32 %v1002_v40, 0.0  ;;  %v1005_v46 = vadd.f32 %v5587_v27, %v1004_v44 }
 0x204   : > { %v1059_v47 = vmax.f32 %v1013_v43, 0.0 }
 0x205   : > { %v1057_v48 = vmax.f32 %v1005_v46, 0.0 }
 0x206   : > { %v1077_v49 = vpack.c.bf16 %v1059_v47, %v1058_v42 }
 0x207   : > { %v1076_v50 = vpack.c.bf16 %v1057_v48, %v1056_v45  ;;  %v5130_v51 = vpop.f32.mrb[28].mxu1 }
 0x208   : > { %v1026_v52 = vadd.f32 %v5130_v51, %v5587_v27  ;;  %v1017_v53 = vpop.f32.mrb[29].mxu1 }
 0x209   : > { %5164 = vmatprep.mubr.msk.bf16.mxu0 %vm822_vm1, %v1076_v50  ;;  %v1018_v54 = vadd.f32 %v5587_v27, %v1017_v53  ;;  %v5131_v55 = vpop.f32.mrb[30].mxu1 }
 0x20a   : > { %v1062_v56 = vmax.f32 %v1026_v52, 0.0  ;;  %5165 = vmatmul.mubr.msk.bf16.gmra.mrb[56].mxu0 %vm822_vm1, %v1077_v49  ;;  %v1029_v57 = vadd.f32 %v5131_v55, %v5587_v27  ;;  %v1020_v58 = vpop.f32.mrb[31].mxu1 }
 0x20b   : > { %v1060_v59 = vmax.f32 %v1018_v54, 0.0  ;;  %v1021_v60 = vadd.f32 %v5587_v27, %v1020_v58 }
 0x20c   : > { %v1063_v61 = vmax.f32 %v1029_v57, 0.0 }
 0x20d   : > { %v1061_v62 = vmax.f32 %v1021_v60, 0.0 }
 0x20e   : > { %v1079_v63 = vpack.c.bf16 %v1063_v61, %v1062_v56 }
 0x20f   : > { %v1078_v0 = vpack.c.bf16 %v1061_v62, %v1060_v59 }
 0x211   : > { %5168 = vmatprep.mubr.msk.bf16.mxu0 %vm822_vm1, %v1078_v0 }
 0x212   : > { %5169 = vmatmul.mubr.msk.bf16.gmra.mrb[60].mxu0 %vm822_vm1, %v1079_v63 }
 0x2ad   : > { %v5142_v4 = vpop.f32.mrb[32].mxu0 }
 0x2ae   : > { %v1210_v27 = vadd.f32 %v5142_v4, %v5640_v3  ;;  %v1201_v5 = vpop.f32.mrb[33].mxu0 }
 0x2af   : > { %v1202_v6 = vadd.f32 %v5640_v3, %v1201_v5  ;;  %v5143_v7 = vpop.f32.mrb[34].mxu0 }
 0x2b0   : > { %v1213_v8 = vadd.f32 %v5143_v7, %v5640_v3  ;;  %v1204_v9 = vpop.f32.mrb[35].mxu0  ;;  %v1330_v11 = vmax.f32 %v1210_v27, 0.0 }
 0x2b1   : > { %v1205_v10 = vadd.f32 %v5640_v3, %v1204_v9  ;;  %v1328_v13 = vmax.f32 %v1202_v6, 0.0 }
 0x2b2   : > { %v1331_v12 = vmax.f32 %v1213_v8, 0.0 }
 0x2b3   : > { %v1329_v14 = vmax.f32 %v1205_v10, 0.0 }
 0x2b4   : > { %v1361_v15 = vpack.c.bf16 %v1331_v12, %v1330_v11 }
 0x2b5   : > { %v1360_v16 = vpack.c.bf16 %v1329_v14, %v1328_v13  ;;  %v5146_v17 = vpop.f32.mrb[36].mxu0 }
 0x2b6   : > { %v1226_v18 = vadd.f32 %v5146_v17, %v5640_v3  ;;  %v1217_v19 = vpop.f32.mrb[37].mxu0 }
 0x2b7   : > { %v1218_v20 = vadd.f32 %v5640_v3, %v1217_v19  ;;  %v5147_v21 = vpop.f32.mrb[38].mxu0  ;;  %5176 = vmatprep.mubr.msk.bf16.mxu1 %vm525_vm0, %v1360_v16 }
 0x2b8   : > { %v1229_v22 = vadd.f32 %v5147_v21, %v5640_v3  ;;  %v1220_v23 = vpop.f32.mrb[39].mxu0  ;;  %5177 = vmatmul.mubr.msk.bf16.vlgmr.msra.gmra.mrb[32].mxu1 %vm525_vm0, %v1361_v15  ;;  %v1334_v25 = vmax.f32 %v1226_v18, 0.0 }
 0x2b9   : > { %v1221_v24 = vadd.f32 %v5640_v3, %v1220_v23  ;;  %v1332_v28 = vmax.f32 %v1218_v20, 0.0 }
 0x2ba   : > { %v1335_v26 = vmax.f32 %v1229_v22, 0.0 }
 0x2bb   : > { %v1333_v29 = vmax.f32 %v1221_v24, 0.0 }
 0x2bc   : > { %v1363_v30 = vpack.c.bf16 %v1335_v26, %v1334_v25 }
 0x2bd   : > { %v1362_v31 = vpack.c.bf16 %v1333_v29, %v1332_v28  ;;  %v5150_v32 = vpop.f32.mrb[40].mxu0 }
 0x2be   : > { %v1242_v33 = vadd.f32 %v5150_v32, %v5640_v3  ;;  %v1233_v34 = vpop.f32.mrb[41].mxu0 }
 0x2bf   : > { %v1234_v35 = vadd.f32 %v5640_v3, %v1233_v34  ;;  %v5151_v36 = vpop.f32.mrb[42].mxu0  ;;  %5180 = vmatprep.mubr.msk.bf16.mxu1 %vm525_vm0, %v1362_v31 }
 0x2c0   : > { %v1245_v37 = vadd.f32 %v5151_v36, %v5640_v3  ;;  %v1236_v38 = vpop.f32.mrb[43].mxu0  ;;  %5181 = vmatmul.mubr.msk.bf16.gmra.mrb[36].mxu1 %vm525_vm0, %v1363_v30  ;;  %v1338_v40 = vmax.f32 %v1242_v33, 0.0 }
 0x2c1   : > { %v1237_v39 = vadd.f32 %v5640_v3, %v1236_v38  ;;  %v1336_v42 = vmax.f32 %v1234_v35, 0.0 }
 0x2c2   : > { %v1339_v41 = vmax.f32 %v1245_v37, 0.0 }
 0x2c3   : > { %v1337_v43 = vmax.f32 %v1237_v39, 0.0 }
 0x2c4   : > { %v1365_v44 = vpack.c.bf16 %v1339_v41, %v1338_v40 }
 0x2c5   : > { %v1364_v45 = vpack.c.bf16 %v1337_v43, %v1336_v42  ;;  %v5154_v46 = vpop.f32.mrb[44].mxu0 }
 0x2c6   : > { %v1258_v47 = vadd.f32 %v5154_v46, %v5640_v3  ;;  %v1249_v48 = vpop.f32.mrb[45].mxu0 }
 0x2c7   : > { %v1250_v49 = vadd.f32 %v5640_v3, %v1249_v48  ;;  %v5155_v50 = vpop.f32.mrb[46].mxu0  ;;  %5184 = vmatprep.mubr.msk.bf16.mxu1 %vm525_vm0, %v1364_v45 }
 0x2c8   : > { %v1261_v51 = vadd.f32 %v5155_v50, %v5640_v3  ;;  %v1252_v52 = vpop.f32.mrb[47].mxu0  ;;  %5185 = vmatmul.mubr.msk.bf16.gmra.mrb[40].mxu1 %vm525_vm0, %v1365_v44  ;;  %v1342_v54 = vmax.f32 %v1258_v47, 0.0 }
 0x2c9   : > { %v1253_v53 = vadd.f32 %v5640_v3, %v1252_v52  ;;  %v1340_v56 = vmax.f32 %v1250_v49, 0.0 }
 0x2ca   : > { %v1343_v55 = vmax.f32 %v1261_v51, 0.0 }
 0x2cb   : > { %v1341_v57 = vmax.f32 %v1253_v53, 0.0  ;;  %v5693_v53 = vld [vmem:[%s6748_s8] ss:$0 sm:$0xff] }
 0x2cc   : > { %v1367_v58 = vpack.c.bf16 %v1343_v55, %v1342_v54 }
 0x2cd   : > { %v1366_v59 = vpack.c.bf16 %v1341_v57, %v1340_v56  ;;  %v5158_v60 = vpop.f32.mrb[48].mxu0 }
 0x2ce   : > { %v1274_v61 = vadd.f32 %v5158_v60, %v5640_v3  ;;  %v1265_v62 = vpop.f32.mrb[49].mxu0 }
 0x2cf   : > { %v1266_v63 = vadd.f32 %v5640_v3, %v1265_v62  ;;  %v5159_v0 = vpop.f32.mrb[50].mxu0  ;;  %5188 = vmatprep.mubr.msk.bf16.mxu1 %vm525_vm0, %v1366_v59 }
 0x2d0   : > { %v1277_v1 = vadd.f32 %v5159_v0, %v5640_v3  ;;  %v1268_v2 = vpop.f32.mrb[51].mxu0  ;;  %5189 = vmatmul.mubr.msk.bf16.gmra.mrb[44].mxu1 %vm525_vm0, %v1367_v58  ;;  %v1346_v27 = vmax.f32 %v1274_v61, 0.0 }
 0x2d1   : > { %v1269_v4 = vadd.f32 %v5640_v3, %v1268_v2  ;;  %v1344_v6 = vmax.f32 %v1266_v63, 0.0 }
 0x2d2   : > { %v1347_v5 = vmax.f32 %v1277_v1, 0.0 }
 0x2d3   : > { %v1345_v7 = vmax.f32 %v1269_v4, 0.0 }
 0x2d4   : > { %v1369_v8 = vpack.c.bf16 %v1347_v5, %v1346_v27  ;;  %v5702_v27 = vld [vmem:[%s6749_s9] ss:$0 sm:$0xff] }
 0x2d5   : > { %v1368_v9 = vpack.c.bf16 %v1345_v7, %v1344_v6  ;;  %v5162_v10 = vpop.f32.mrb[52].mxu0 }
 0x2d6   : > { %v1290_v11 = vadd.f32 %v5162_v10, %v5640_v3  ;;  %v1281_v12 = vpop.f32.mrb[53].mxu0 }
 0x2d7   : > { %v1282_v13 = vadd.f32 %v5640_v3, %v1281_v12  ;;  %v5163_v14 = vpop.f32.mrb[54].mxu0  ;;  %5192 = vmatprep.mubr.msk.bf16.mxu1 %vm525_vm0, %v1368_v9 }
 0x2d8   : > { %v1293_v15 = vadd.f32 %v5163_v14, %v5640_v3  ;;  %v1284_v16 = vpop.f32.mrb[55].mxu0  ;;  %5193 = vmatmul.mubr.msk.bf16.gmra.mrb[48].mxu1 %vm525_vm0, %v1369_v8  ;;  %v1350_v18 = vmax.f32 %v1290_v11, 0.0 }
 0x2d9   : > { %v1285_v17 = vadd.f32 %v5640_v3, %v1284_v16  ;;  %v1348_v20 = vmax.f32 %v1282_v13, 0.0 }
 0x2da   : > { %v1351_v19 = vmax.f32 %v1293_v15, 0.0 }
 0x2db   : > { %v1349_v21 = vmax.f32 %v1285_v17, 0.0 }
 0x2dc   : > { %v1371_v22 = vpack.c.bf16 %v1351_v19, %v1350_v18 }
 0x2dd   : > { %v1370_v23 = vpack.c.bf16 %v1349_v21, %v1348_v20  ;;  %v5166_v24 = vpop.f32.mrb[56].mxu0 }
 0x2de   : > { %v1306_v25 = vadd.f32 %v5166_v24, %v5640_v3  ;;  %v1297_v26 = vpop.f32.mrb[57].mxu0 }
 0x2df   : > { %v1298_v28 = vadd.f32 %v5640_v3, %v1297_v26  ;;  %v5167_v29 = vpop.f32.mrb[58].mxu0  ;;  %5196 = vmatprep.mubr.msk.bf16.mxu1 %vm525_vm0, %v1370_v23 }
 0x2e0   : > { %v1354_v30 = vmax.f32 %v1306_v25, 0.0  ;;  %v1309_v31 = vadd.f32 %v5167_v29, %v5640_v3  ;;  %v1300_v32 = vpop.f32.mrb[59].mxu0  ;;  %5197 = vmatmul.mubr.msk.bf16.gmra.mrb[52].mxu1 %vm525_vm0, %v1371_v22 }
 0x2e1   : > { %v1301_v33 = vadd.f32 %v5640_v3, %v1300_v32  ;;  %v1352_v35 = vmax.f32 %v1298_v28, 0.0 }
 0x2e2   : > { %v1355_v34 = vmax.f32 %v1309_v31, 0.0 }
 0x2e3   : > { %v1353_v36 = vmax.f32 %v1301_v33, 0.0 }
 0x2e4   : > { %v1373_v37 = vpack.c.bf16 %v1355_v34, %v1354_v30 }
 0x2e5   : > { %v1372_v38 = vpack.c.bf16 %v1353_v36, %v1352_v35  ;;  %v5170_v39 = vpop.f32.mrb[60].mxu0 }
 0x2e6   : > { %v1322_v40 = vadd.f32 %v5170_v39, %v5640_v3  ;;  %v1313_v41 = vpop.f32.mrb[61].mxu0 }
 0x2e7   : > { %5200 = vmatprep.mubr.msk.bf16.mxu1 %vm525_vm0, %v1372_v38  ;;  %v1314_v42 = vadd.f32 %v5640_v3, %v1313_v41  ;;  %v5171_v43 = vpop.f32.mrb[62].mxu0 }
 0x2e8   : > { %v1358_v44 = vmax.f32 %v1322_v40, 0.0  ;;  %5201 = vmatmul.mubr.msk.bf16.gmra.mrb[56].mxu1 %vm525_vm0, %v1373_v37  ;;  %v1325_v45 = vadd.f32 %v5171_v43, %v5640_v3  ;;  %v1316_v46 = vpop.f32.mrb[63].mxu0 }
 0x2e9   : > { %v1356_v47 = vmax.f32 %v1314_v42, 0.0  ;;  %v1317_v48 = vadd.f32 %v5640_v3, %v1316_v46 }
 0x2ea   : > { %v1359_v49 = vmax.f32 %v1325_v45, 0.0 }
 0x2eb   : > { %v1357_v50 = vmax.f32 %v1317_v48, 0.0 }
 0x2ec   : > { %v1375_v51 = vpack.c.bf16 %v1359_v49, %v1358_v44 }
 0x2ed   : > { %v1374_v52 = vpack.c.bf16 %v1357_v50, %v1356_v47 }
 0x2ef   : > { %5204 = vmatprep.mubr.msk.bf16.mxu1 %vm525_vm0, %v1374_v52 }
 0x2f0   : > { %5205 = vmatmul.mubr.msk.bf16.gmra.mrb[60].mxu1 %vm525_vm0, %v1375_v51 }
 0x38b   : > { %v5178_v54 = vpop.f32.mrb[32].mxu1 }
 0x38c   : > { %v1490_v55 = vadd.f32 %v5178_v54, %v5693_v53  ;;  %v1481_v56 = vpop.f32.mrb[33].mxu1 }
 0x38d   : > { %v1482_v57 = vadd.f32 %v5693_v53, %v1481_v56  ;;  %v5179_v3 = vpop.f32.mrb[34].mxu1 }
 0x38e   : > { %v1493_v58 = vadd.f32 %v5179_v3, %v5693_v53  ;;  %v1484_v59 = vpop.f32.mrb[35].mxu1  ;;  %v1610_v61 = vmax.f32 %v1490_v55, 0.0 }
 0x38f   : > { %v1485_v60 = vadd.f32 %v5693_v53, %v1484_v59  ;;  %v1608_v63 = vmax.f32 %v1482_v57, 0.0 }
 0x390   : > { %v1611_v62 = vmax.f32 %v1493_v58, 0.0 }
 0x391   : > { %v1609_v0 = vmax.f32 %v1485_v60, 0.0 }
 0x392   : > { %v1641_v1 = vpack.c.bf16 %v1611_v62, %v1610_v61 }
 0x393   : > { %v1640_v2 = vpack.c.bf16 %v1609_v0, %v1608_v63  ;;  %v5182_v4 = vpop.f32.mrb[36].mxu1 }
 0x394   : > { %v1506_v5 = vadd.f32 %v5182_v4, %v5693_v53  ;;  %v1497_v6 = vpop.f32.mrb[37].mxu1  ;;  %v1658_v7 = vunpack.c.l.bf16 %v1641_v1  ;;  %v1659_v8 = vunpack.c.h.bf16 %v1641_v1 }
 0x395   : > { %v1498_v9 = vadd.f32 %v5693_v53, %v1497_v6  ;;  %v5183_v10 = vpop.f32.mrb[38].mxu1  ;;  %v1656_v11 = vunpack.c.l.bf16 %v1640_v2  ;;  %v1657_v12 = vunpack.c.h.bf16 %v1640_v2 }
 0x396   : > { %v1509_v13 = vadd.f32 %v5183_v10, %v5693_v53  ;;  %v1500_v14 = vpop.f32.mrb[39].mxu1  ;;  %v1697_v15 = vmul.f32 %v5702_v27, %v1658_v7  ;;  %v1614_v18 = vmax.f32 %v1506_v5, 0.0  ;;  %v1698_v21 = vmul.f32 %v5702_v27, %v1659_v8 }
 0x397   : > { %v1501_v16 = vadd.f32 %v5693_v53, %v1500_v14  ;;  %v1695_v17 = vmul.f32 %v5702_v27, %v1656_v11  ;;  %v1612_v22 = vmax.f32 %v1498_v9, 0.0  ;;  %v1696_v25 = vmul.f32 %v5702_v27, %v1657_v12 }
 0x398   : > { %v1615_v19 = vmax.f32 %v1509_v13, 0.0  ;;  %v1733_v20 = vsel %vm525_vm0, %v1697_v15, 0.0  ;;  %v1736_v32 = vsel %vm525_vm0, %v1698_v21, 0.0 }
 0x399   : > { %v1613_v23 = vmax.f32 %v1501_v16, 0.0  ;;  %1734 = vadd.xlane.f32.xlu1 %v1733_v20  ;;  %v1727_v24 = vsel %vm525_vm0, %v1695_v17, 0.0  ;;  %v1730_v37 = vsel %vm525_vm0, %v1696_v25, 0.0 }
 0x39a   : > { %v1643_v26 = vpack.c.bf16 %v1615_v19, %v1614_v18  ;;  %1728 = vadd.xlane.f32.xlu0 %v1727_v24 }
 0x39b   : > { %v1642_v28 = vpack.c.bf16 %v1613_v23, %v1612_v22  ;;  %v5186_v29 = vpop.f32.mrb[40].mxu1 }
 0x39c   : > { %v1522_v30 = vadd.f32 %v5186_v29, %v5693_v53  ;;  %v1513_v31 = vpop.f32.mrb[41].mxu1  ;;  %v1663_v33 = vunpack.c.h.bf16 %v1643_v26  ;;  %v1662_v34 = vunpack.c.l.bf16 %v1643_v26 }
 0x39d   : > { %v1514_v35 = vadd.f32 %v5693_v53, %v1513_v31  ;;  %1737 = vadd.xlane.f32.xlu1 %v1736_v32  ;;  %v5187_v36 = vpop.f32.mrb[42].mxu1  ;;  %v1661_v38 = vunpack.c.h.bf16 %v1642_v28  ;;  %v1660_v39 = vunpack.c.l.bf16 %v1642_v28 }
 0x39e   : > { %v1525_v40 = vadd.f32 %v5187_v36, %v5693_v53  ;;  %v1516_v41 = vpop.f32.mrb[43].mxu1  ;;  %1731 = vadd.xlane.f32.xlu0 %v1730_v37  ;;  %v1702_v42 = vmul.f32 %v5702_v27, %v1663_v33  ;;  %v1701_v43 = vmul.f32 %v5702_v27, %v1662_v34  ;;  %v1618_v44 = vmax.f32 %v1522_v30, 0.0 }
 0x39f   : > { %v1517_v45 = vadd.f32 %v5693_v53, %v1516_v41  ;;  %v1700_v49 = vmul.f32 %v5702_v27, %v1661_v38  ;;  %v1616_v50 = vmax.f32 %v1514_v35, 0.0  ;;  %v1699_v52 = vmul.f32 %v5702_v27, %v1660_v39 }
 0x3a0   : > { %v1619_v46 = vmax.f32 %v1525_v40, 0.0  ;;  %v1748_v47 = vsel %vm525_vm0, %v1702_v42, 0.0  ;;  %v1745_v48 = vsel %vm525_vm0, %v1701_v43, 0.0 }
 0x3a1   : > { %v1617_v51 = vmax.f32 %v1517_v45, 0.0  ;;  %1749 = vadd.xlane.f32.xlu1 %v1748_v47  ;;  %v1742_v58 = vsel %vm525_vm0, %v1700_v49, 0.0  ;;  %v1739_v63 = vsel %vm525_vm0, %v1699_v52, 0.0 }
 0x3a2   : > { %v1645_v54 = vpack.c.bf16 %v1619_v46, %v1618_v44  ;;  %1746 = vadd.xlane.f32.xlu0 %v1745_v48 }
 0x3a3   : > { %v1644_v55 = vpack.c.bf16 %v1617_v51, %v1616_v50  ;;  %v5190_v56 = vpop.f32.mrb[44].mxu1 }
 0x3a4   : > { %v1538_v57 = vadd.f32 %v5190_v56, %v5693_v53  ;;  %v1529_v3 = vpop.f32.mrb[45].mxu1  ;;  %v1667_v59 = vunpack.c.h.bf16 %v1645_v54  ;;  %v1666_v60 = vunpack.c.l.bf16 %v1645_v54 }
 0x3a5   : > { %v1530_v61 = vadd.f32 %v5693_v53, %v1529_v3  ;;  %v5191_v62 = vpop.f32.mrb[46].mxu1  ;;  %1743 = vadd.xlane.f32.xlu1 %v1742_v58  ;;  %v1665_v0 = vunpack.c.h.bf16 %v1644_v55  ;;  %v1664_v1 = vunpack.c.l.bf16 %v1644_v55 }
 0x3a6   : > { %v1541_v2 = vadd.f32 %v5191_v62, %v5693_v53  ;;  %v1532_v4 = vpop.f32.mrb[47].mxu1  ;;  %1740 = vadd.xlane.f32.xlu0 %v1739_v63  ;;  %v1706_v5 = vmul.f32 %v5702_v27, %v1667_v59  ;;  %v1705_v6 = vmul.f32 %v5702_v27, %v1666_v60  ;;  %v1622_v7 = vmax.f32 %v1538_v57, 0.0 }
 0x3a7   : > { %v1533_v8 = vadd.f32 %v5693_v53, %v1532_v4  ;;  %v1704_v12 = vmul.f32 %v5702_v27, %v1665_v0  ;;  %v1620_v13 = vmax.f32 %v1530_v61, 0.0  ;;  %v1703_v15 = vmul.f32 %v5702_v27, %v1664_v1 }
 0x3a8   : > { %v1623_v9 = vmax.f32 %v1541_v2, 0.0  ;;  %v1760_v10 = vsel %vm525_vm0, %v1706_v5, 0.0  ;;  %v1757_v11 = vsel %vm525_vm0, %v1705_v6, 0.0 }
 0x3a9   : > { %v1621_v14 = vmax.f32 %v1533_v8, 0.0  ;;  %1761 = vadd.xlane.f32.xlu1 %v1760_v10  ;;  %v1754_v21 = vsel %vm525_vm0, %v1704_v12, 0.0  ;;  %v1751_v26 = vsel %vm525_vm0, %v1703_v15, 0.0 }
 0x3aa   : > { %v1647_v16 = vpack.c.bf16 %v1623_v9, %v1622_v7  ;;  %1758 = vadd.xlane.f32.xlu0 %v1757_v11 }
 0x3ab   : > { %v1646_v17 = vpack.c.bf16 %v1621_v14, %v1620_v13  ;;  %v5194_v18 = vpop.f32.mrb[48].mxu1 }
 0x3ac   : > { %v1554_v19 = vadd.f32 %v5194_v18, %v5693_v53  ;;  %v1545_v20 = vpop.f32.mrb[49].mxu1  ;;  %v1671_v22 = vunpack.c.h.bf16 %v1647_v16  ;;  %v1670_v23 = vunpack.c.l.bf16 %v1647_v16 }
 0x3ad   : > { %v1546_v24 = vadd.f32 %v5693_v53, %v1545_v20  ;;  %v5195_v25 = vpop.f32.mrb[50].mxu1  ;;  %1755 = vadd.xlane.f32.xlu1 %v1754_v21  ;;  %v1669_v28 = vunpack.c.h.bf16 %v1646_v17  ;;  %v1668_v29 = vunpack.c.l.bf16 %v1646_v17 }
 0x3ae   : > { %v1557_v30 = vadd.f32 %v5195_v25, %v5693_v53  ;;  %v1548_v31 = vpop.f32.mrb[51].mxu1  ;;  %1752 = vadd.xlane.f32.xlu0 %v1751_v26  ;;  %v1710_v32 = vmul.f32 %v5702_v27, %v1671_v22  ;;  %v1709_v33 = vmul.f32 %v5702_v27, %v1670_v23  ;;  %v1626_v34 = vmax.f32 %v1554_v19, 0.0 }
 0x3af   : > { %v1549_v35 = vadd.f32 %v5693_v53, %v1548_v31  ;;  %v1708_v39 = vmul.f32 %v5702_v27, %v1669_v28  ;;  %v1624_v40 = vmax.f32 %v1546_v24, 0.0  ;;  %v1707_v42 = vmul.f32 %v5702_v27, %v1668_v29 }
 0x3b0   : > { %v1627_v36 = vmax.f32 %v1557_v30, 0.0  ;;  %v1772_v37 = vsel %vm525_vm0, %v1710_v32, 0.0  ;;  %v1769_v38 = vsel %vm525_vm0, %v1709_v33, 0.0 }
 0x3b1   : > { %v1625_v41 = vmax.f32 %v1549_v35, 0.0  ;;  %1773 = vadd.xlane.f32.xlu1 %v1772_v37  ;;  %v1766_v48 = vsel %vm525_vm0, %v1708_v39, 0.0  ;;  %v1763_v54 = vsel %vm525_vm0, %v1707_v42, 0.0 }
 0x3b2   : > { %v1649_v43 = vpack.c.bf16 %v1627_v36, %v1626_v34  ;;  %1770 = vadd.xlane.f32.xlu0 %v1769_v38 }
 0x3b3   : > { %v1648_v44 = vpack.c.bf16 %v1625_v41, %v1624_v40  ;;  %v5198_v45 = vpop.f32.mrb[52].mxu1 }
 0x3b4   : > { %v1570_v46 = vadd.f32 %v5198_v45, %v5693_v53  ;;  %v1561_v47 = vpop.f32.mrb[53].mxu1  ;;  %v1675_v49 = vunpack.c.h.bf16 %v1649_v43  ;;  %v1674_v50 = vunpack.c.l.bf16 %v1649_v43 }
 0x3b5   : > { %v1562_v51 = vadd.f32 %v5693_v53, %v1561_v47  ;;  %v5199_v52 = vpop.f32.mrb[54].mxu1  ;;  %1767 = vadd.xlane.f32.xlu1 %v1766_v48  ;;  %v1673_v55 = vunpack.c.h.bf16 %v1648_v44  ;;  %v1672_v56 = vunpack.c.l.bf16 %v1648_v44 }
 0x3b6   : > { %v1573_v57 = vadd.f32 %v5199_v52, %v5693_v53  ;;  %v1564_v3 = vpop.f32.mrb[55].mxu1  ;;  %1764 = vadd.xlane.f32.xlu0 %v1763_v54  ;;  %v1714_v58 = vmul.f32 %v5702_v27, %v1675_v49  ;;  %v1713_v59 = vmul.f32 %v5702_v27, %v1674_v50  ;;  %v1630_v60 = vmax.f32 %v1570_v46, 0.0 }
 0x3b7   : > { %v1565_v61 = vadd.f32 %v5693_v53, %v1564_v3  ;;  %v1712_v1 = vmul.f32 %v5702_v27, %v1673_v55  ;;  %v1628_v2 = vmax.f32 %v1562_v51, 0.0  ;;  %v1711_v5 = vmul.f32 %v5702_v27, %v1672_v56 }
 0x3b8   : > { %v1631_v62 = vmax.f32 %v1573_v57, 0.0  ;;  %v1784_v63 = vsel %vm525_vm0, %v1714_v58, 0.0  ;;  %v1781_v0 = vsel %vm525_vm0, %v1713_v59, 0.0 }
 0x3b9   : > { %v1629_v4 = vmax.f32 %v1565_v61, 0.0  ;;  %1785 = vadd.xlane.f32.xlu1 %v1784_v63  ;;  %v1778_v11 = vsel %vm525_vm0, %v1712_v1, 0.0  ;;  %v1775_v15 = vsel %vm525_vm0, %v1711_v5, 0.0 }
 0x3ba   : > { %v1651_v6 = vpack.c.bf16 %v1631_v62, %v1630_v60  ;;  %1782 = vadd.xlane.f32.xlu0 %v1781_v0 }
 0x3bb   : > { %v1650_v7 = vpack.c.bf16 %v1629_v4, %v1628_v2  ;;  %v5202_v8 = vpop.f32.mrb[56].mxu1 }
 0x3bc   : > { %v1586_v9 = vadd.f32 %v5202_v8, %v5693_v53  ;;  %v1577_v10 = vpop.f32.mrb[57].mxu1  ;;  %v1678_v12 = vunpack.c.l.bf16 %v1651_v6  ;;  %v1679_v17 = vunpack.c.h.bf16 %v1651_v6 }
 0x3bd   : > { %v1578_v13 = vadd.f32 %v5693_v53, %v1577_v10  ;;  %v5203_v14 = vpop.f32.mrb[58].mxu1  ;;  %1779 = vadd.xlane.f32.xlu1 %v1778_v11  ;;  %v1677_v16 = vunpack.c.h.bf16 %v1650_v7  ;;  %v1676_v26 = vunpack.c.l.bf16 %v1650_v7  ;;  %v1829_v11 = vlaneseq }
 0x3be   : > { %v1589_v18 = vadd.f32 %v5203_v14, %v5693_v53  ;;  %v1580_v19 = vpop.f32.mrb[59].mxu1  ;;  %1776 = vadd.xlane.f32.xlu0 %v1775_v15  ;;  %v1717_v20 = vmul.f32 %v5702_v27, %v1678_v12  ;;  %v1634_v23 = vmax.f32 %v1586_v9, 0.0  ;;  %v1718_v31 = vmul.f32 %v5702_v27, %v1679_v17  ;;  %v1827_v15 = vpop.permute.xlu1 %1826 }
 0x3bf   : > { %v1581_v21 = vadd.f32 %v5693_v53, %v1580_v19  ;;  %v1716_v22 = vmul.f32 %v5702_v27, %v1677_v16  ;;  %v1632_v28 = vmax.f32 %v1578_v13, 0.0  ;;  %v1715_v41 = vmul.f32 %v5702_v27, %v1676_v26 }
 0x3c0   : > { %v1635_v24 = vmax.f32 %v1589_v18, 0.0  ;;  %v1793_v25 = vsel %vm525_vm0, %v1717_v20, 0.0  ;;  %v1796_v39 = vsel %vm525_vm0, %v1718_v31, 0.0  ;;  %v5797_v12 = vshrl.u32 %v1829_v11, 7 }
 0x3c1   : > { %v1633_v29 = vmax.f32 %v1581_v21, 0.0  ;;  %v1790_v30 = vsel %vm525_vm0, %v1716_v22, 0.0  ;;  %v1787_v52 = vsel %vm525_vm0, %v1715_v41, 0.0  ;;  %vm4793_vm1 = vcmp.lt.s32.totalorder %v1829_v11, 256 }
 0x3c2   : > { %v1653_v32 = vpack.c.bf16 %v1635_v24, %v1634_v23  ;;  %1791 = vadd.xlane.f32.xlu1 %v1790_v30  ;;  %1794 = vadd.xlane.f32.xlu0 %v1793_v25  ;;  %v5800_v14 = vsub.s32 0, %v5797_v12  ;;  %v5806_v18 = vsub.s32 1, %v5797_v12  ;;  %v5809_v19 = vsub.s32 2, %v5797_v12 }
 0x3c3   : > { %v1652_v33 = vpack.c.bf16 %v1633_v29, %v1632_v28  ;;  %v5206_v34 = vpop.f32.mrb[60].mxu1  ;;  %v5812_v20 = vsub.s32 3, %v5797_v12  ;;  %v5815_v22 = vsub.s32 4, %v5797_v12  ;;  %v5818_v23 = vsub.s32 5, %v5797_v12 }
 0x3c4   : > { %v1602_v35 = vadd.f32 %v5206_v34, %v5693_v53  ;;  %v1593_v36 = vpop.f32.mrb[61].mxu1  ;;  %v1683_v37 = vunpack.c.h.bf16 %v1653_v32  ;;  %v1682_v42 = vunpack.c.l.bf16 %v1653_v32  ;;  %v5803_v17 = vrot.slane %v1827_v15, %v5800_v14 }
 0x3c5   : > { %v1594_v38 = vadd.f32 %v5693_v53, %v1593_v36  ;;  %v5207_v40 = vpop.f32.mrb[62].mxu1  ;;  %v1680_v55 = vunpack.c.l.bf16 %v1652_v33  ;;  %v1681_v3 = vunpack.c.h.bf16 %v1652_v33  ;;  %v5821_v24 = vsub.s32 6, %v5797_v12 }
 0x3c6   : > { %v1638_v43 = vmax.f32 %v1602_v35, 0.0  ;;  %1797 = vadd.xlane.f32.xlu0 %v1796_v39  ;;  %v1605_v44 = vadd.f32 %v5207_v40, %v5693_v53  ;;  %v1596_v45 = vpop.f32.mrb[63].mxu1  ;;  %v1722_v46 = vmul.f32 %v5702_v27, %v1683_v37  ;;  %v1721_v54 = vmul.f32 %v5702_v27, %v1682_v42 }
 0x3c7   : > { %v1636_v47 = vmax.f32 %v1594_v38, 0.0  ;;  %v1597_v48 = vadd.f32 %v5693_v53, %v1596_v45  ;;  %v1719_v53 = vmul.f32 %v5702_v27, %v1680_v55  ;;  %v1720_v5 = vmul.f32 %v5702_v27, %v1681_v3 }
 0x3c8   : > { %v1639_v49 = vmax.f32 %v1605_v44, 0.0  ;;  %v1808_v50 = vsel %vm525_vm0, %v1722_v46, 0.0  ;;  %v1805_v60 = vsel %vm525_vm0, %v1721_v54, 0.0  ;;  %v5824_v25 = vsub.s32 7, %v5797_v12 }
 0x3c9   : > { %v1637_v51 = vmax.f32 %v1597_v48, 0.0  ;;  %1809 = vadd.xlane.f32.xlu1 %v1808_v50  ;;  %v1799_v4 = vsel %vm525_vm0, %v1719_v53, 0.0  ;;  %v1802_v6 = vsel %vm525_vm0, %v1720_v5, 0.0 }
 0x3ca   : > { %v1655_v56 = vpack.c.bf16 %v1639_v49, %v1638_v43  ;;  %1788 = vadd.xlane.f32.xlu0 %v1787_v52 }
 0x3cb   : > { %v1654_v57 = vpack.c.bf16 %v1637_v51, %v1636_v47 }
 0x3cc   : > { %v1686_v58 = vunpack.c.l.bf16 %v1655_v56  ;;  %v1687_v59 = vunpack.c.h.bf16 %v1655_v56 }
 0x3cd   : > { %v1684_v61 = vunpack.c.l.bf16 %v1654_v57  ;;  %v1685_v62 = vunpack.c.h.bf16 %v1654_v57 }
 0x3ce   : > { %1806 = vadd.xlane.f32.xlu0 %v1805_v60  ;;  %v1725_v63 = vmul.f32 %v5702_v27, %v1686_v58  ;;  %v1726_v0 = vmul.f32 %v5702_v27, %v1687_v59 }
 0x3cf   : > { %v1723_v1 = vmul.f32 %v5702_v27, %v1684_v61  ;;  %v1724_v2 = vmul.f32 %v5702_v27, %v1685_v62  ;;  %v5344_v27 = vmov 1966171168  }
 0x3d0   : > { %v1817_v7 = vsel %vm525_vm0, %v1725_v63, 0.0  ;;  %v1820_v10 = vsel %vm525_vm0, %v1726_v0, 0.0  ;;  %v2926_v13 = vunpack.c.l.s4 %v5344_v27 }
 0x3d1   : > { %v1811_v8 = vsel %vm525_vm0, %v1723_v1, 0.0  ;;  %v1814_v9 = vsel %vm525_vm0, %v1724_v2, 0.0  ;;  %vm4694_vm0 = vcmask 1048512  }
 0x3d2   : > { %1800 = vadd.xlane.f32.xlu0 %v1799_v4  ;;  %v2927_v16 = vunpack.c.0.s8 %v2926_v13 }
 0x3d4   : > { %v5829_v30 = vsub.s32 %v2927_v16, %v5797_v12 }
 0x3d6   : > { %1803 = vadd.xlane.f32.xlu0 %v1802_v6 }
 0x3da   : > { %1818 = vadd.xlane.f32.xlu0 %v1817_v7 }
 0x3de   : > { %1812 = vadd.xlane.f32.xlu0 %v1811_v8 }
 0x3e2   : > { %1815 = vadd.xlane.f32.xlu0 %v1814_v9 }
 0x3e6   : > { %1821 = vadd.xlane.f32.xlu0 %v1820_v10 }
 0x426   : > { %v1735_v21 = vpop.xlane.xlu1 %1734 }
 0x427   : > { %v1835_v26 = vadd.f32 %v5803_v17, %v1735_v21  ;;  %v1729_v28 = vpop.xlane.xlu0 %1728 }
 0x428   : > { %v1833_v29 = vadd.f32 %v5803_v17, %v1729_v28 }
 0x429   : > { %v1964_v31 = vrot.slane %v1835_v26, %v5800_v14  ;;  %v1968_v32 = vrot.slane %v1835_v26, %v5806_v18  ;;  %v1972_v33 = vrot.slane %v1835_v26, %v5809_v19  ;;  %v1976_v34 = vrot.slane %v1835_v26, %v5812_v20 }
 0x42a   : > { %v1738_v35 = vpop.xlane.xlu1 %1737  ;;  %v1980_v36 = vrot.slane %v1835_v26, %v5815_v22  ;;  %v1984_v37 = vrot.slane %v1835_v26, %v5818_v23  ;;  %v1988_v38 = vrot.slane %v1835_v26, %v5821_v24  ;;  %v1992_v39 = vrot.slane %v1835_v26, %v5824_v25 }
 0x42b   : > { %v1836_v40 = vadd.f32 %v5803_v17, %v1738_v35  ;;  %v1732_v41 = vpop.xlane.xlu0 %1731  ;;  %v3019_v42 = vcombine.low %v1964_v31, %v1968_v32  ;;  %v3020_v43 = vcombine.low %v1972_v33, %v1976_v34  ;;  %v1900_v44 = vrot.slane %v1833_v29, %v5800_v14 }
 0x42c   : > { %v5842_v45 = vadd.f32 %v5803_v17, %v1732_v41  ;;  %v3021_v46 = vcombine.low %v1980_v36, %v1984_v37  ;;  %v3022_v47 = vcombine.low %v1988_v38, %v1992_v39  ;;  %v1904_v48 = vrot.slane %v1833_v29, %v5806_v18 }
 0x42d   : > { %v3029_v49 = vrot.slane %v3019_v42, %v5829_v30  ;;  %v3036_v50 = vrot.slane %v3020_v43, %v5829_v30  ;;  %v1908_v51 = vrot.slane %v1833_v29, %v5809_v19  ;;  %v1912_v52 = vrot.slane %v1833_v29, %v5812_v20 }
 0x42e   : > { %v1750_v54 = vpop.xlane.xlu1 %1749  ;;  %v3043_v55 = vrot.slane %v3021_v46, %v5829_v30  ;;  %v3050_v56 = vrot.slane %v3022_v47, %v5829_v30  ;;  %v1916_v57 = vrot.slane %v1833_v29, %v5815_v22  ;;  %v1920_v3 = vrot.slane %v1833_v29, %v5818_v23 }
 0x42f   : > { %v5854_v58 = vadd.f32 %v5803_v17, %v1750_v54  ;;  %v1747_v59 = vpop.xlane.xlu0 %1746  ;;  %v3051_v60 = vcombine.low %v3029_v49, %v3036_v50  ;;  %v1924_v53 = vrot.slane %v1833_v29, %v5821_v24  ;;  %v1928_v61 = vrot.slane %v1833_v29, %v5824_v25 }
 0x430   : > { %v5859_v62 = vadd.f32 %v5803_v17, %v1747_v59  ;;  %v3052_v63 = vcombine.low %v3043_v55, %v3050_v56  ;;  %v2921_v0 = vcombine.low %v1900_v44, %v1904_v48  ;;  %v2922_v1 = vcombine.low %v1908_v51, %v1912_v52 }
 0x431   : > { %v3059_v2 = vrot.slane %v3051_v60, %v5829_v30  ;;  %v2923_v4 = vcombine.low %v1916_v57, %v1920_v3  ;;  %v2924_v5 = vcombine.low %v1924_v53, %v1928_v61  ;;  %v1996_v6 = vrot.slane %v1836_v40, %v5800_v14 }
 0x432   : > { %v1744_v7 = vpop.xlane.xlu1 %1743  ;;  %v3066_v8 = vrot.slane %v3052_v63, %v5829_v30  ;;  %v2931_v9 = vrot.slane %v2921_v0, %v5829_v30  ;;  %v2938_v10 = vrot.slane %v2922_v1, %v5829_v30  ;;  %v2000_v27 = vrot.slane %v1836_v40, %v5806_v18 }
 0x433   : > { %v5868_v13 = vadd.f32 %v5803_v17, %v1744_v7  ;;  %v1741_v15 = vpop.xlane.xlu0 %1740  ;;  %v2945_v16 = vrot.slane %v2923_v4, %v5829_v30  ;;  %v2952_v21 = vrot.slane %v2924_v5, %v5829_v30  ;;  %v2004_v26 = vrot.slane %v1836_v40, %v5809_v19 }
 0x434   : > { %v5874_v28 = vadd.f32 %v5803_v17, %v1741_v15  ;;  %v3067_v29 = vcombine.low %v3059_v2, %v3066_v8  ;;  %v2953_v31 = vcombine.low %v2931_v9, %v2938_v10  ;;  %v2008_v32 = vrot.slane %v1836_v40, %v5812_v20 }
 0x435   : > { %v2954_v33 = vcombine.low %v2945_v16, %v2952_v21  ;;  %v2012_v34 = vrot.slane %v1836_v40, %v5815_v22  ;;  %v2016_v35 = vrot.slane %v1836_v40, %v5818_v23  ;;  %v2020_v36 = vrot.slane %v1836_v40, %v5821_v24 }
 0x436   : > { %4496 = vperm.xlu1 %5249, %v3067_v29   ;;  %v1762_v37 = vpop.xlane.xlu1 %1761  ;;  %v2961_v38 = vrot.slane %v2953_v31, %v5829_v30  ;;  %v2024_v39 = vrot.slane %v1836_v40, %v5824_v25  ;;  %v3068_v41 = vcombine.low %v1996_v6, %v2000_v27  ;;  %v3069_v42 = vcombine.low %v2004_v26, %v2008_v32 }
 0x437   : > { %v5883_v43 = vadd.f32 %v5803_v17, %v1762_v37  ;;  %v2968_v44 = vrot.slane %v2954_v33, %v5829_v30  ;;  %v1759_v46 = vpop.xlane.xlu0 %1758  ;;  %v3070_v47 = vcombine.low %v2012_v34, %v2016_v35  ;;  %v1932_v48 = vrot.slane %v5842_v45, %v5800_v14 }
 0x438   : > { %v5889_v49 = vadd.f32 %v5803_v17, %v1759_v46  ;;  %v3071_v50 = vcombine.low %v2020_v36, %v2024_v39  ;;  %v3078_v51 = vrot.slane %v3068_v41, %v5829_v30  ;;  %v3085_v40 = vrot.slane %v3069_v42, %v5829_v30 }
 0x439   : > { %v2969_v52 = vcombine.low %v2961_v38, %v2968_v44  ;;  %v3092_v54 = vrot.slane %v3070_v47, %v5829_v30  ;;  %v1936_v55 = vrot.slane %v5842_v45, %v5806_v18  ;;  %v1940_v56 = vrot.slane %v5842_v45, %v5809_v19 }
 0x43a   : > { %v3099_v57 = vrot.slane %v3071_v50, %v5829_v30  ;;  %v3100_v3 = vcombine.low %v3078_v51, %v3085_v40  ;;  %v1756_v59 = vpop.xlane.xlu1 %1755  ;;  %v1944_v60 = vrot.slane %v5842_v45, %v5812_v20  ;;  %v1948_v53 = vrot.slane %v5842_v45, %v5815_v22 }
 0x43b   : > { %4490 = vperm.xlu0 %5250, %v2969_v52   ;;  %v5904_v61 = vadd.f32 %v5803_v17, %v1756_v59  ;;  %v1753_v63 = vpop.xlane.xlu0 %1752  ;;  %v1952_v0 = vrot.slane %v5842_v45, %v5818_v23  ;;  %v1956_v1 = vrot.slane %v5842_v45, %v5821_v24  ;;  %v1960_v2 = vrot.slane %v5842_v45, %v5824_v25 }
 0x43c   : > { %v3101_v4 = vcombine.low %v3092_v54, %v3099_v57  ;;  %v3108_v5 = vrot.slane %v3100_v3, %v5829_v30  ;;  %v5914_v6 = vadd.f32 %v5803_v17, %v1753_v63  ;;  %v2970_v7 = vcombine.low %v1932_v48, %v1936_v55 }
 0x43d   : > { %v2971_v8 = vcombine.low %v1940_v56, %v1944_v60  ;;  %v2972_v9 = vcombine.low %v1948_v53, %v1952_v0  ;;  %v2973_v10 = vcombine.low %v1956_v1, %v1960_v2  ;;  %v2092_v27 = vrot.slane %v5859_v62, %v5800_v14 }
 0x43e   : > { %v3115_v15 = vrot.slane %v3101_v4, %v5829_v30  ;;  %v2980_v16 = vrot.slane %v2970_v7, %v5829_v30  ;;  %v1774_v21 = vpop.xlane.xlu1 %1773  ;;  %v2096_v45 = vrot.slane %v5859_v62, %v5806_v18  ;;  %v2100_v26 = vrot.slane %v5859_v62, %v5809_v19 }
 0x43f   : > { %v2987_v29 = vrot.slane %v2971_v8, %v5829_v30  ;;  %v2994_v31 = vrot.slane %v2972_v9, %v5829_v30  ;;  %v3001_v32 = vrot.slane %v2973_v10, %v5829_v30  ;;  %v5928_v33 = vadd.f32 %v5803_v17, %v1774_v21  ;;  %v1771_v34 = vpop.xlane.xlu0 %1770 }
 0x440   : > { %v3116_v35 = vcombine.low %v3108_v5, %v3115_v15  ;;  %v5931_v36 = vadd.f32 %v5803_v17, %v1771_v34  ;;  %v2104_v37 = vrot.slane %v5859_v62, %v5812_v20  ;;  %v2108_v38 = vrot.slane %v5859_v62, %v5815_v22 }
 0x441   : > { %v3002_v39 = vcombine.low %v2980_v16, %v2987_v29  ;;  %v3003_v41 = vcombine.low %v2994_v31, %v3001_v32  ;;  %v2112_v42 = vrot.slane %v5859_v62, %v5818_v23  ;;  %v2116_v44 = vrot.slane %v5859_v62, %v5821_v24 }
 0x442   : > { %4499 = vperm.xlu1 %5249, %v3116_v35   ;;  %v2120_v46 = vrot.slane %v5859_v62, %v5824_v25  ;;  %v3215_v47 = vcombine.low %v2092_v27, %v2096_v45  ;;  %v3216_v48 = vcombine.low %v2100_v26, %v2104_v37  ;;  %v1768_v50 = vpop.xlane.xlu1 %1767  ;;  %v2124_v51 = vrot.slane %v5854_v58, %v5800_v14 }
 0x443   : > { %v3010_v40 = vrot.slane %v3002_v39, %v5829_v30  ;;  %v3017_v52 = vrot.slane %v3003_v41, %v5829_v30  ;;  %v3217_v54 = vcombine.low %v2108_v38, %v2112_v42  ;;  %v5948_v55 = vadd.f32 %v5803_v17, %v1768_v50  ;;  %v1765_v56 = vpop.xlane.xlu0 %1764 }
 0x444   : > { %v3218_v57 = vcombine.low %v2116_v44, %v2120_v46  ;;  %v3225_v3 = vrot.slane %v3215_v47, %v5829_v30  ;;  %v3232_v62 = vrot.slane %v3216_v48, %v5829_v30  ;;  %v5953_v59 = vadd.f32 %v5803_v17, %v1765_v56 }
 0x445   : > { %v3018_v60 = vcombine.low %v3010_v40, %v3017_v52  ;;  %v3239_v53 = vrot.slane %v3217_v54, %v5829_v30  ;;  %v2128_v63 = vrot.slane %v5854_v58, %v5806_v18  ;;  %v2132_v0 = vrot.slane %v5854_v58, %v5809_v19 }
 0x446   : > { %v3246_v1 = vrot.slane %v3218_v57, %v5829_v30  ;;  %v3247_v2 = vcombine.low %v3225_v3, %v3232_v62  ;;  %v2136_v4 = vrot.slane %v5854_v58, %v5812_v20  ;;  %v2140_v5 = vrot.slane %v5854_v58, %v5815_v22  ;;  %v1786_v7 = vpop.xlane.xlu1 %1785 }
 0x447   : > { %4493 = vperm.xlu1 %5249, %v3018_v60   ;;  %v2144_v8 = vrot.slane %v5854_v58, %v5818_v23  ;;  %v2148_v9 = vrot.slane %v5854_v58, %v5821_v24  ;;  %v2152_v10 = vrot.slane %v5854_v58, %v5824_v25  ;;  %v3264_v27 = vcombine.low %v2124_v51, %v2128_v63  ;;  %v1783_v15 = vpop.xlane.xlu0 %1782 }
 0x448   : > { %v3248_v16 = vcombine.low %v3239_v53, %v3246_v1  ;;  %v3255_v21 = vrot.slane %v3247_v2, %v5829_v30  ;;  %v3265_v45 = vcombine.low %v2132_v0, %v2136_v4  ;;  %v5973_v26 = vadd.f32 %v5803_v17, %v1786_v7 }
 0x449   : > { %v3266_v29 = vcombine.low %v2140_v5, %v2144_v8  ;;  %v3267_v31 = vcombine.low %v2148_v9, %v2152_v10  ;;  %v3274_v32 = vrot.slane %v3264_v27, %v5829_v30  ;;  %v5977_v34 = vadd.f32 %v5803_v17, %v1783_v15 }
 0x44a   : > { %v3262_v35 = vrot.slane %v3248_v16, %v5829_v30  ;;  %v3281_v58 = vrot.slane %v3265_v45, %v5829_v30  ;;  %v2028_v37 = vrot.slane %v5874_v28, %v5800_v14  ;;  %v2032_v38 = vrot.slane %v5874_v28, %v5806_v18  ;;  %v1780_v46 = vpop.xlane.xlu1 %1779 }
 0x44b   : > { %v3288_v39 = vrot.slane %v3266_v29, %v5829_v30  ;;  %v3295_v41 = vrot.slane %v3267_v31, %v5829_v30  ;;  %v2036_v42 = vrot.slane %v5874_v28, %v5809_v19  ;;  %v2040_v44 = vrot.slane %v5874_v28, %v5812_v20  ;;  %v1777_v47 = vpop.xlane.xlu0 %1776 }
 0x44c   : > { %v3263_v48 = vcombine.low %v3255_v21, %v3262_v35  ;;  %v3296_v50 = vcombine.low %v3274_v32, %v3281_v58  ;;  %v2044_v51 = vrot.slane %v5874_v28, %v5815_v22  ;;  %v2048_v40 = vrot.slane %v5874_v28, %v5818_v23 }
 0x44d   : > { %v3297_v52 = vcombine.low %v3288_v39, %v3295_v41  ;;  %v2052_v54 = vrot.slane %v5874_v28, %v5821_v24  ;;  %v2056_v56 = vrot.slane %v5874_v28, %v5824_v25  ;;  %v3117_v57 = vcombine.low %v2028_v37, %v2032_v38 }
 0x44e   : > { %4508 = vperm.xlu1 %5249, %v3263_v48   ;;  %v3304_v3 = vrot.slane %v3296_v50, %v5829_v30  ;;  %v3118_v62 = vcombine.low %v2036_v42, %v2040_v44  ;;  %v3119_v60 = vcombine.low %v2044_v51, %v2048_v40  ;;  %v6001_v53 = vadd.f32 %v5803_v17, %v1780_v46 }
 0x44f   : > { %v3311_v63 = vrot.slane %v3297_v52, %v5829_v30  ;;  %v3120_v0 = vcombine.low %v2052_v54, %v2056_v56  ;;  %v3127_v1 = vrot.slane %v3117_v57, %v5829_v30  ;;  %v6006_v2 = vadd.f32 %v5803_v17, %v1777_v47  ;;  %v1792_v15 = vpop.xlane.xlu1 %1791  ;;  %v1795_v16 = vpop.xlane.xlu0 %1794 }
 0x450   : > { %v3134_v4 = vrot.slane %v3118_v62, %v5829_v30  ;;  %v3141_v28 = vrot.slane %v3119_v60, %v5829_v30  ;;  %v2060_v5 = vrot.slane %v5868_v13, %v5800_v14  ;;  %v2064_v7 = vrot.slane %v5868_v13, %v5806_v18 }
 0x451   : > { %v3312_v8 = vcombine.low %v3304_v3, %v3311_v63  ;;  %v3148_v9 = vrot.slane %v3120_v0, %v5829_v30  ;;  %v2068_v10 = vrot.slane %v5868_v13, %v5809_v19  ;;  %v2072_v27 = vrot.slane %v5868_v13, %v5812_v20 }
 0x452   : > { %v3149_v21 = vcombine.low %v3127_v1, %v3134_v4  ;;  %v2076_v45 = vrot.slane %v5868_v13, %v5815_v22  ;;  %v2080_v29 = vrot.slane %v5868_v13, %v5818_v23  ;;  %v2084_v31 = vrot.slane %v5868_v13, %v5821_v24 }
 0x453   : > { %4511 = vperm.xlu1 %5249, %v3312_v8   ;;  %v3150_v32 = vcombine.low %v3141_v28, %v3148_v9  ;;  %v2088_v35 = vrot.slane %v5868_v13, %v5824_v25  ;;  %v3166_v58 = vcombine.low %v2060_v5, %v2064_v7  ;;  %v3167_v37 = vcombine.low %v2068_v10, %v2072_v27  ;;  %v1798_v3 = vpop.xlane.xlu0 %1797 }
 0x454   : > { %v3157_v38 = vrot.slane %v3149_v21, %v5829_v30  ;;  %v3168_v39 = vcombine.low %v2076_v45, %v2080_v29  ;;  %v6029_v41 = vadd.f32 %v5803_v17, %v1792_v15  ;;  %v6032_v42 = vadd.f32 %v5803_v17, %v1795_v16 }
 0x455   : > { %v3164_v44 = vrot.slane %v3150_v32, %v5829_v30  ;;  %v3169_v46 = vcombine.low %v2084_v31, %v2088_v35  ;;  %v3176_v47 = vrot.slane %v3166_v58, %v5829_v30  ;;  %v3183_v48 = vrot.slane %v3167_v37, %v5829_v30 }
 0x456   : > { %v3190_v13 = vrot.slane %v3168_v39, %v5829_v30  ;;  %v2220_v50 = vrot.slane %v5889_v49, %v5800_v14  ;;  %v2224_v51 = vrot.slane %v5889_v49, %v5806_v18  ;;  %v2228_v40 = vrot.slane %v5889_v49, %v5809_v19  ;;  %v1810_v32 = vpop.xlane.xlu1 %1809 }
 0x457   : > { %v3165_v52 = vcombine.low %v3157_v38, %v3164_v44  ;;  %v3197_v54 = vrot.slane %v3169_v46, %v5829_v30  ;;  %v3198_v56 = vcombine.low %v3176_v47, %v3183_v48  ;;  %v2232_v57 = vrot.slane %v5889_v49, %v5812_v20 }
 0x458   : > { %v2236_v62 = vrot.slane %v5889_v49, %v5815_v22  ;;  %v2240_v60 = vrot.slane %v5889_v49, %v5818_v23  ;;  %v2244_v63 = vrot.slane %v5889_v49, %v5821_v24  ;;  %v2248_v0 = vrot.slane %v5889_v49, %v5824_v25 }
 0x459   : > { %4502 = vperm.xlu1 %5249, %v3165_v52   ;;  %v3199_v1 = vcombine.low %v3190_v13, %v3197_v54  ;;  %v3206_v4 = vrot.slane %v3198_v56, %v5829_v30  ;;  %v3411_v28 = vcombine.low %v2220_v50, %v2224_v51  ;;  %v3412_v5 = vcombine.low %v2228_v40, %v2232_v57 }
 0x45a   : > { %v3413_v7 = vcombine.low %v2236_v62, %v2240_v60  ;;  %v3414_v8 = vcombine.low %v2244_v63, %v2248_v0  ;;  %v6057_v9 = vadd.f32 %v5803_v17, %v1798_v3  ;;  %v2252_v10 = vrot.slane %v5883_v43, %v5800_v14  ;;  %v1789_v60 = vpop.xlane.xlu0 %1788 }
 0x45b   : > { %v3213_v27 = vrot.slane %v3199_v1, %v5829_v30  ;;  %v3421_v15 = vrot.slane %v3411_v28, %v5829_v30  ;;  %v3428_v49 = vrot.slane %v3412_v5, %v5829_v30  ;;  %v2256_v16 = vrot.slane %v5883_v43, %v5806_v18 }
 0x45c   : > { %v3435_v21 = vrot.slane %v3413_v7, %v5829_v30  ;;  %v3442_v45 = vrot.slane %v3414_v8, %v5829_v30  ;;  %v2260_v29 = vrot.slane %v5883_v43, %v5809_v19  ;;  %v2264_v31 = vrot.slane %v5883_v43, %v5812_v20 }
 0x45d   : > { %v3214_v35 = vcombine.low %v3206_v4, %v3213_v27  ;;  %v3443_v58 = vcombine.low %v3421_v15, %v3428_v49  ;;  %v2268_v37 = vrot.slane %v5883_v43, %v5815_v22  ;;  %v2272_v38 = vrot.slane %v5883_v43, %v5818_v23 }
 0x45e   : > { %v3444_v39 = vcombine.low %v3435_v21, %v3442_v45  ;;  %v2276_v44 = vrot.slane %v5883_v43, %v5821_v24  ;;  %v2280_v46 = vrot.slane %v5883_v43, %v5824_v25  ;;  %v3460_v47 = vcombine.low %v2252_v10, %v2256_v16 }
 0x45f   : > { %4505 = vperm.xlu1 %5249, %v3214_v35   ;;  %v3451_v48 = vrot.slane %v3443_v58, %v5829_v30  ;;  %v3461_v13 = vcombine.low %v2260_v29, %v2264_v31  ;;  %v3462_v50 = vcombine.low %v2268_v37, %v2272_v38  ;;  %v6082_v51 = vadd.f32 %v5803_v17, %v1810_v32 }
 0x460   : > { %v3458_v40 = vrot.slane %v3444_v39, %v5829_v30  ;;  %v3463_v52 = vcombine.low %v2276_v44, %v2280_v46  ;;  %v3470_v54 = vrot.slane %v3460_v47, %v5829_v30  ;;  %v2476_v56 = vrot.slane %v5977_v34, %v5800_v14 }
 0x461   : > { %v3477_v57 = vrot.slane %v3461_v13, %v5829_v30  ;;  %v3484_v43 = vrot.slane %v3462_v50, %v5829_v30  ;;  %v2480_v3 = vrot.slane %v5977_v34, %v5806_v18  ;;  %v2484_v62 = vrot.slane %v5977_v34, %v5809_v19 }
 0x462   : > { %v3459_v63 = vcombine.low %v3451_v48, %v3458_v40  ;;  %v3491_v0 = vrot.slane %v3463_v52, %v5829_v30  ;;  %v2488_v1 = vrot.slane %v5977_v34, %v5812_v20  ;;  %v2492_v4 = vrot.slane %v5977_v34, %v5815_v22 }
 0x463   : > { %v3492_v28 = vcombine.low %v3470_v54, %v3477_v57  ;;  %v2496_v5 = vrot.slane %v5977_v34, %v5818_v23  ;;  %v2500_v7 = vrot.slane %v5977_v34, %v5821_v24  ;;  %v2504_v8 = vrot.slane %v5977_v34, %v5824_v25 }
 0x464   : > { %4520 = vperm.xlu1 %5249, %v3459_v63   ;;  %v3493_v10 = vcombine.low %v3484_v43, %v3491_v0  ;;  %v3803_v27 = vcombine.low %v2476_v56, %v2480_v3  ;;  %v3804_v15 = vcombine.low %v2484_v62, %v2488_v1  ;;  %v6106_v49 = vadd.f32 %v5803_v17, %v1789_v60 }
 0x465   : > { %v3500_v16 = vrot.slane %v3492_v28, %v5829_v30  ;;  %v3805_v21 = vcombine.low %v2492_v4, %v2496_v5  ;;  %v3806_v45 = vcombine.low %v2500_v7, %v2504_v8  ;;  %v2156_v29 = vrot.slane %v5914_v6, %v5800_v14  ;;  %v1807_v28 = vpop.xlane.xlu0 %1806 }
 0x466   : > { %v3507_v31 = vrot.slane %v3493_v10, %v5829_v30  ;;  %v3813_v32 = vrot.slane %v3803_v27, %v5829_v30  ;;  %v3820_v34 = vrot.slane %v3804_v15, %v5829_v30  ;;  %v2160_v35 = vrot.slane %v5914_v6, %v5806_v18 }
 0x467   : > { %v3827_v58 = vrot.slane %v3805_v21, %v5829_v30  ;;  %v3834_v37 = vrot.slane %v3806_v45, %v5829_v30  ;;  %v2164_v38 = vrot.slane %v5914_v6, %v5809_v19  ;;  %v2168_v39 = vrot.slane %v5914_v6, %v5812_v20 }
 0x468   : > { %v3508_v44 = vcombine.low %v3500_v16, %v3507_v31  ;;  %v3835_v46 = vcombine.low %v3813_v32, %v3820_v34  ;;  %v2172_v47 = vrot.slane %v5914_v6, %v5815_v22  ;;  %v2176_v48 = vrot.slane %v5914_v6, %v5818_v23 }
 0x469   : > { %v3836_v13 = vcombine.low %v3827_v58, %v3834_v37  ;;  %v2180_v50 = vrot.slane %v5914_v6, %v5821_v24  ;;  %v2184_v40 = vrot.slane %v5914_v6, %v5824_v25  ;;  %v3313_v52 = vcombine.low %v2156_v29, %v2160_v35 }
 0x46a   : > { %4523 = vperm.xlu1 %5249, %v3508_v44   ;;  %v3843_v54 = vrot.slane %v3835_v46, %v5829_v30  ;;  %v3314_v56 = vcombine.low %v2164_v38, %v2168_v39  ;;  %v3315_v57 = vcombine.low %v2172_v47, %v2176_v48  ;;  %v2508_v43 = vrot.slane %v5973_v26, %v5800_v14 }
 0x46b   : > { %v3850_v3 = vrot.slane %v3836_v13, %v5829_v30  ;;  %v3316_v62 = vcombine.low %v2180_v50, %v2184_v40  ;;  %v3323_v60 = vrot.slane %v3313_v52, %v5829_v30  ;;  %v2512_v63 = vrot.slane %v5973_v26, %v5806_v18 }
 0x46c   : > { %v3330_v0 = vrot.slane %v3314_v56, %v5829_v30  ;;  %v3337_v6 = vrot.slane %v3315_v57, %v5829_v30  ;;  %v2516_v1 = vrot.slane %v5973_v26, %v5809_v19  ;;  %v2520_v4 = vrot.slane %v5973_v26, %v5812_v20 }
 0x46d   : > { %v3851_v5 = vcombine.low %v3843_v54, %v3850_v3  ;;  %v3344_v7 = vrot.slane %v3316_v62, %v5829_v30  ;;  %v2524_v8 = vrot.slane %v5973_v26, %v5815_v22  ;;  %v2528_v10 = vrot.slane %v5973_v26, %v5818_v23 }
 0x46e   : > { %v3345_v27 = vcombine.low %v3323_v60, %v3330_v0  ;;  %v2532_v15 = vrot.slane %v5973_v26, %v5821_v24  ;;  %v2536_v16 = vrot.slane %v5973_v26, %v5824_v25  ;;  %v3852_v21 = vcombine.low %v2508_v43, %v2512_v63 }
 0x46f   : > { %4544 = vperm.xlu0 %5250, %v3851_v5   ;;  %v3346_v45 = vcombine.low %v3337_v6, %v3344_v7  ;;  %v3853_v29 = vcombine.low %v2516_v1, %v2520_v4  ;;  %v3854_v31 = vcombine.low %v2524_v8, %v2528_v10  ;;  %v6153_v32 = vadd.f32 %v5803_v17, %v1807_v28  ;;  %v1801_v10 = vpop.xlane.xlu0 %1800 }
 0x470   : > { %v3353_v34 = vrot.slane %v3345_v27, %v5829_v30  ;;  %v3855_v35 = vcombine.low %v2532_v15, %v2536_v16  ;;  %v3862_v58 = vrot.slane %v3852_v21, %v5829_v30  ;;  %v2188_v37 = vrot.slane %v5904_v61, %v5800_v14 }
 0x471   : > { %v3360_v38 = vrot.slane %v3346_v45, %v5829_v30  ;;  %v3869_v26 = vrot.slane %v3853_v29, %v5829_v30  ;;  %v3876_v39 = vrot.slane %v3854_v31, %v5829_v30  ;;  %v2192_v44 = vrot.slane %v5904_v61, %v5806_v18 }
 0x472   : > { %v3883_v46 = vrot.slane %v3855_v35, %v5829_v30  ;;  %v2196_v47 = vrot.slane %v5904_v61, %v5809_v19  ;;  %v2200_v48 = vrot.slane %v5904_v61, %v5812_v20  ;;  %v2204_v13 = vrot.slane %v5904_v61, %v5815_v22 }
 0x473   : > { %v3361_v50 = vcombine.low %v3353_v34, %v3360_v38  ;;  %v3884_v40 = vcombine.low %v3862_v58, %v3869_v26  ;;  %v2208_v52 = vrot.slane %v5904_v61, %v5818_v23  ;;  %v2212_v54 = vrot.slane %v5904_v61, %v5821_v24 }
 0x474   : > { %v3885_v56 = vcombine.low %v3876_v39, %v3883_v46  ;;  %v2216_v57 = vrot.slane %v5904_v61, %v5824_v25  ;;  %v3362_v43 = vcombine.low %v2188_v37, %v2192_v44  ;;  %v3363_v3 = vcombine.low %v2196_v47, %v2200_v48 }
 0x475   : > { %4514 = vperm.xlu1 %5249, %v3361_v50   ;;  %v3892_v62 = vrot.slane %v3884_v40, %v5829_v30  ;;  %v3364_v60 = vcombine.low %v2204_v13, %v2208_v52  ;;  %v2604_v63 = vrot.slane %v6032_v42, %v5800_v14  ;;  %v2608_v0 = vrot.slane %v6032_v42, %v5806_v18 }
 0x476   : > { %v3899_v6 = vrot.slane %v3885_v56, %v5829_v30  ;;  %v3365_v1 = vcombine.low %v2212_v54, %v2216_v57  ;;  %v3372_v4 = vrot.slane %v3362_v43, %v5829_v30  ;;  %v3379_v28 = vrot.slane %v3363_v3, %v5829_v30 }
 0x477   : > { %v3386_v61 = vrot.slane %v3364_v60, %v5829_v30  ;;  %v2612_v5 = vrot.slane %v6032_v42, %v5809_v19  ;;  %v2616_v7 = vrot.slane %v6032_v42, %v5812_v20  ;;  %v2620_v8 = vrot.slane %v6032_v42, %v5815_v22 }
 0x478   : > { %v3900_v27 = vcombine.low %v3892_v62, %v3899_v6  ;;  %v3393_v15 = vrot.slane %v3365_v1, %v5829_v30  ;;  %v3394_v16 = vcombine.low %v3372_v4, %v3379_v28  ;;  %v2624_v21 = vrot.slane %v6032_v42, %v5818_v23 }
 0x479   : > { %v2628_v45 = vrot.slane %v6032_v42, %v5821_v24  ;;  %v2632_v29 = vrot.slane %v6032_v42, %v5824_v25  ;;  %v3999_v31 = vcombine.low %v2604_v63, %v2608_v0  ;;  %v4000_v34 = vcombine.low %v2612_v5, %v2616_v7 }
 0x47a   : > { %4547 = vperm.xlu0 %5250, %v3900_v27   ;;  %v3395_v35 = vcombine.low %v3386_v61, %v3393_v15  ;;  %v3402_v58 = vrot.slane %v3394_v16, %v5829_v30  ;;  %v4001_v37 = vcombine.low %v2620_v8, %v2624_v21  ;;  %v6201_v38 = vadd.f32 %v5803_v17, %v1801_v10  ;;  %v1804_v16 = vpop.xlane.xlu0 %1803 }
 0x47b   : > { %v4002_v26 = vcombine.low %v2628_v45, %v2632_v29  ;;  %v4009_v39 = vrot.slane %v3999_v31, %v5829_v30  ;;  %v4016_v44 = vrot.slane %v4000_v34, %v5829_v30  ;;  %v2412_v46 = vrot.slane %v6006_v2, %v5800_v14 }
 0x47c   : > { %v3409_v42 = vrot.slane %v3395_v35, %v5829_v30  ;;  %v4023_v47 = vrot.slane %v4001_v37, %v5829_v30  ;;  %v2416_v48 = vrot.slane %v6006_v2, %v5806_v18  ;;  %v2420_v13 = vrot.slane %v6006_v2, %v5809_v19 }
 0x47d   : > { %v4030_v50 = vrot.slane %v4002_v26, %v5829_v30  ;;  %v4031_v40 = vcombine.low %v4009_v39, %v4016_v44  ;;  %v2424_v52 = vrot.slane %v6006_v2, %v5812_v20  ;;  %v2428_v54 = vrot.slane %v6006_v2, %v5815_v22 }
 0x47e   : > { %v3410_v56 = vcombine.low %v3402_v58, %v3409_v42  ;;  %v2432_v57 = vrot.slane %v6006_v2, %v5818_v23  ;;  %v2436_v43 = vrot.slane %v6006_v2, %v5821_v24  ;;  %v2440_v3 = vrot.slane %v6006_v2, %v5824_v25 }
 0x47f   : > { %v4032_v62 = vcombine.low %v4023_v47, %v4030_v50  ;;  %v4039_v60 = vrot.slane %v4031_v40, %v5829_v30  ;;  %v3705_v63 = vcombine.low %v2412_v46, %v2416_v48  ;;  %v3706_v0 = vcombine.low %v2420_v13, %v2424_v52 }
 0x480   : > { %4517 = vperm.xlu1 %5249, %v3410_v56   ;;  %v3707_v6 = vcombine.low %v2428_v54, %v2432_v57  ;;  %v3708_v1 = vcombine.low %v2436_v43, %v2440_v3  ;;  %v2636_v4 = vrot.slane %v6057_v9, %v5800_v14  ;;  %v2640_v28 = vrot.slane %v6057_v9, %v5806_v18 }
 0x481   : > { %v4046_v61 = vrot.slane %v4032_v62, %v5829_v30  ;;  %v3715_v5 = vrot.slane %v3705_v63, %v5829_v30  ;;  %v3722_v2 = vrot.slane %v3706_v0, %v5829_v30  ;;  %v2644_v7 = vrot.slane %v6057_v9, %v5809_v19 }
 0x482   : > { %v3729_v8 = vrot.slane %v3707_v6, %v5829_v30  ;;  %v3736_v10 = vrot.slane %v3708_v1, %v5829_v30  ;;  %v2648_v27 = vrot.slane %v6057_v9, %v5812_v20  ;;  %v2652_v15 = vrot.slane %v6057_v9, %v5815_v22 }
 0x483   : > { %v4047_v21 = vcombine.low %v4039_v60, %v4046_v61  ;;  %v3737_v45 = vcombine.low %v3715_v5, %v3722_v2  ;;  %v2656_v29 = vrot.slane %v6057_v9, %v5818_v23  ;;  %v2660_v31 = vrot.slane %v6057_v9, %v5821_v24 }
 0x484   : > { %v3738_v34 = vcombine.low %v3729_v8, %v3736_v10  ;;  %v2664_v35 = vrot.slane %v6057_v9, %v5824_v25  ;;  %v4048_v58 = vcombine.low %v2636_v4, %v2640_v28  ;;  %v4049_v37 = vcombine.low %v2644_v7, %v2648_v27 }
 0x485   : > { %4556 = vperm.xlu0 %5250, %v4047_v21   ;;  %v3745_v26 = vrot.slane %v3737_v45, %v5829_v30  ;;  %v4050_v39 = vcombine.low %v2652_v15, %v2656_v29  ;;  %v6248_v44 = vadd.f32 %v5803_v17, %v1804_v16  ;;  %v2444_v46 = vrot.slane %v6001_v53, %v5800_v14  ;;  %v1819_v45 = vpop.xlane.xlu0 %1818 }
 0x486   : > { %v3752_v42 = vrot.slane %v3738_v34, %v5829_v30  ;;  %v4051_v47 = vcombine.low %v2660_v31, %v2664_v35  ;;  %v4058_v48 = vrot.slane %v4048_v58, %v5829_v30  ;;  %v4065_v13 = vrot.slane %v4049_v37, %v5829_v30 }
 0x487   : > { %v4072_v9 = vrot.slane %v4050_v39, %v5829_v30  ;;  %v2448_v50 = vrot.slane %v6001_v53, %v5806_v18  ;;  %v2452_v40 = vrot.slane %v6001_v53, %v5809_v19  ;;  %v2456_v52 = vrot.slane %v6001_v53, %v5812_v20 }
 0x488   : > { %v3753_v54 = vcombine.low %v3745_v26, %v3752_v42  ;;  %v4079_v56 = vrot.slane %v4051_v47, %v5829_v30  ;;  %v4080_v57 = vcombine.low %v4058_v48, %v4065_v13  ;;  %v2460_v43 = vrot.slane %v6001_v53, %v5815_v22 }
 0x489   : > { %v2464_v3 = vrot.slane %v6001_v53, %v5818_v23  ;;  %v2468_v62 = vrot.slane %v6001_v53, %v5821_v24  ;;  %v2472_v60 = vrot.slane %v6001_v53, %v5824_v25  ;;  %v3754_v63 = vcombine.low %v2444_v46, %v2448_v50 }
 0x48a   : > { %4538 = vperm.xlu1 %5249, %v3753_v54   ;;  %v4081_v0 = vcombine.low %v4072_v9, %v4079_v56  ;;  %v4088_v6 = vrot.slane %v4080_v57, %v5829_v30  ;;  %v3755_v1 = vcombine.low %v2452_v40, %v2456_v52  ;;  %v2540_v4 = vrot.slane %v6106_v49, %v5800_v14 }
 0x48b   : > { %v3756_v28 = vcombine.low %v2460_v43, %v2464_v3  ;;  %v3757_v61 = vcombine.low %v2468_v62, %v2472_v60  ;;  %v3764_v5 = vrot.slane %v3754_v63, %v5829_v30  ;;  %v2544_v2 = vrot.slane %v6106_v49, %v5806_v18 }
 0x48c   : > { %v4095_v7 = vrot.slane %v4081_v0, %v5829_v30  ;;  %v3771_v53 = vrot.slane %v3755_v1, %v5829_v30  ;;  %v2548_v8 = vrot.slane %v6106_v49, %v5809_v19  ;;  %v2552_v10 = vrot.slane %v6106_v49, %v5812_v20 }
 0x48d   : > { %v3778_v27 = vrot.slane %v3756_v28, %v5829_v30  ;;  %v3785_v15 = vrot.slane %v3757_v61, %v5829_v30  ;;  %v2556_v16 = vrot.slane %v6106_v49, %v5815_v22  ;;  %v2560_v21 = vrot.slane %v6106_v49, %v5818_v23 }
 0x48e   : > { %v4096_v29 = vcombine.low %v4088_v6, %v4095_v7  ;;  %v3786_v31 = vcombine.low %v3764_v5, %v3771_v53  ;;  %v2564_v34 = vrot.slane %v6106_v49, %v5821_v24  ;;  %v2568_v35 = vrot.slane %v6106_v49, %v5824_v25 }
 0x48f   : > { %v3787_v58 = vcombine.low %v3778_v27, %v3785_v15  ;;  %v3901_v37 = vcombine.low %v2540_v4, %v2544_v2  ;;  %v3902_v26 = vcombine.low %v2548_v8, %v2552_v10  ;;  %v3903_v39 = vcombine.low %v2556_v16, %v2560_v21  ;;  %v1813_v15 = vpop.xlane.xlu0 %1812 }
 0x490   : > { %4559 = vperm.xlu0 %5250, %v4096_v29   ;;  %v3794_v46 = vrot.slane %v3786_v31, %v5829_v30  ;;  %v3904_v42 = vcombine.low %v2564_v34, %v2568_v35  ;;  %v6295_v47 = vadd.f32 %v5803_v17, %v1819_v45  ;;  %v2284_v48 = vrot.slane %v5953_v59, %v5800_v14 }
 0x491   : > { %v3801_v13 = vrot.slane %v3787_v58, %v5829_v30  ;;  %v3911_v9 = vrot.slane %v3901_v37, %v5829_v30  ;;  %v3918_v49 = vrot.slane %v3902_v26, %v5829_v30  ;;  %v3925_v50 = vrot.slane %v3903_v39, %v5829_v30 }
 0x492   : > { %v3932_v40 = vrot.slane %v3904_v42, %v5829_v30  ;;  %v2288_v52 = vrot.slane %v5953_v59, %v5806_v18  ;;  %v2292_v54 = vrot.slane %v5953_v59, %v5809_v19  ;;  %v2296_v56 = vrot.slane %v5953_v59, %v5812_v20 }
 0x493   : > { %v3802_v57 = vcombine.low %v3794_v46, %v3801_v13  ;;  %v3933_v43 = vcombine.low %v3911_v9, %v3918_v49  ;;  %v2300_v3 = vrot.slane %v5953_v59, %v5815_v22  ;;  %v2304_v62 = vrot.slane %v5953_v59, %v5818_v23 }
 0x494   : > { %v3934_v60 = vcombine.low %v3925_v50, %v3932_v40  ;;  %v2308_v63 = vrot.slane %v5953_v59, %v5821_v24  ;;  %v2312_v0 = vrot.slane %v5953_v59, %v5824_v25  ;;  %v3509_v6 = vcombine.low %v2284_v48, %v2288_v52 }
 0x495   : > { %4541 = vperm.xlu1 %5249, %v3802_v57   ;;  %v3941_v1 = vrot.slane %v3933_v43, %v5829_v30  ;;  %v3510_v4 = vcombine.low %v2292_v54, %v2296_v56  ;;  %v3511_v28 = vcombine.low %v2300_v3, %v2304_v62  ;;  %v2572_v61 = vrot.slane %v6029_v41, %v5800_v14 }
 0x496   : > { %v3948_v5 = vrot.slane %v3934_v60, %v5829_v30  ;;  %v3512_v2 = vcombine.low %v2308_v63, %v2312_v0  ;;  %v3519_v7 = vrot.slane %v3509_v6, %v5829_v30  ;;  %v2576_v53 = vrot.slane %v6029_v41, %v5806_v18 }
 0x497   : > { %v3526_v8 = vrot.slane %v3510_v4, %v5829_v30  ;;  %v3533_v59 = vrot.slane %v3511_v28, %v5829_v30  ;;  %v2580_v10 = vrot.slane %v6029_v41, %v5809_v19  ;;  %v2584_v27 = vrot.slane %v6029_v41, %v5812_v20 }
 0x498   : > { %v3949_v16 = vcombine.low %v3941_v1, %v3948_v5  ;;  %v3540_v21 = vrot.slane %v3512_v2, %v5829_v30  ;;  %v2588_v45 = vrot.slane %v6029_v41, %v5815_v22  ;;  %v2592_v29 = vrot.slane %v6029_v41, %v5818_v23 }
 0x499   : > { %v3541_v31 = vcombine.low %v3519_v7, %v3526_v8  ;;  %v2596_v34 = vrot.slane %v6029_v41, %v5821_v24  ;;  %v2600_v35 = vrot.slane %v6029_v41, %v5824_v25  ;;  %v3950_v58 = vcombine.low %v2572_v61, %v2576_v53 }
 0x49a   : > { %4550 = vperm.xlu0 %5250, %v3949_v16   ;;  %v3542_v37 = vcombine.low %v3533_v59, %v3540_v21  ;;  %v3951_v26 = vcombine.low %v2580_v10, %v2584_v27  ;;  %v3952_v39 = vcombine.low %v2588_v45, %v2592_v29  ;;  %v6341_v46 = vadd.f32 %v5803_v17, %v1813_v15  ;;  %v1816_v15 = vpop.xlane.xlu0 %1815 }
 0x49b   : > { %v3549_v42 = vrot.slane %v3541_v31, %v5829_v30  ;;  %v3953_v48 = vcombine.low %v2596_v34, %v2600_v35  ;;  %v3960_v13 = vrot.slane %v3950_v58, %v5829_v30  ;;  %v2316_v9 = vrot.slane %v5948_v55, %v5800_v14 }
 0x49c   : > { %v3556_v49 = vrot.slane %v3542_v37, %v5829_v30  ;;  %v3967_v41 = vrot.slane %v3951_v26, %v5829_v30  ;;  %v3974_v50 = vrot.slane %v3952_v39, %v5829_v30  ;;  %v2320_v40 = vrot.slane %v5948_v55, %v5806_v18 }
 0x49d   : > { %v3981_v52 = vrot.slane %v3953_v48, %v5829_v30  ;;  %v2324_v54 = vrot.slane %v5948_v55, %v5809_v19  ;;  %v2328_v56 = vrot.slane %v5948_v55, %v5812_v20  ;;  %v2332_v57 = vrot.slane %v5948_v55, %v5815_v22 }
 0x49e   : > { %v3557_v43 = vcombine.low %v3549_v42, %v3556_v49  ;;  %v3982_v3 = vcombine.low %v3960_v13, %v3967_v41  ;;  %v2336_v62 = vrot.slane %v5948_v55, %v5818_v23  ;;  %v2340_v60 = vrot.slane %v5948_v55, %v5821_v24 }
 0x49f   : > { %v3983_v63 = vcombine.low %v3974_v50, %v3981_v52  ;;  %v2344_v0 = vrot.slane %v5948_v55, %v5824_v25  ;;  %v3558_v6 = vcombine.low %v2316_v9, %v2320_v40  ;;  %v3559_v1 = vcombine.low %v2324_v54, %v2328_v56 }
 0x4a0   : > { %4526 = vperm.xlu1 %5249, %v3557_v43   ;;  %v3990_v4 = vrot.slane %v3982_v3, %v5829_v30  ;;  %v3560_v28 = vcombine.low %v2332_v57, %v2336_v62  ;;  %v2732_v61 = vrot.slane %v6153_v32, %v5800_v14  ;;  %v2736_v5 = vrot.slane %v6153_v32, %v5806_v18 }
 0x4a1   : > { %v3997_v2 = vrot.slane %v3983_v63, %v5829_v30  ;;  %v3561_v7 = vcombine.low %v2340_v60, %v2344_v0  ;;  %v3568_v53 = vrot.slane %v3558_v6, %v5829_v30  ;;  %v3575_v8 = vrot.slane %v3559_v1, %v5829_v30 }
 0x4a2   : > { %v3582_v55 = vrot.slane %v3560_v28, %v5829_v30  ;;  %v2740_v59 = vrot.slane %v6153_v32, %v5809_v19  ;;  %v2744_v10 = vrot.slane %v6153_v32, %v5812_v20  ;;  %v2748_v27 = vrot.slane %v6153_v32, %v5815_v22 }
 0x4a3   : > { %v3998_v16 = vcombine.low %v3990_v4, %v3997_v2  ;;  %v3589_v21 = vrot.slane %v3561_v7, %v5829_v30  ;;  %v3590_v45 = vcombine.low %v3568_v53, %v3575_v8  ;;  %v2752_v29 = vrot.slane %v6153_v32, %v5818_v23 }
 0x4a4   : > { %v2756_v31 = vrot.slane %v6153_v32, %v5821_v24  ;;  %v2760_v34 = vrot.slane %v6153_v32, %v5824_v25  ;;  %v4195_v35 = vcombine.low %v2732_v61, %v2736_v5  ;;  %v4196_v58 = vcombine.low %v2740_v59, %v2744_v10 }
 0x4a5   : > { %4553 = vperm.xlu0 %5250, %v3998_v16   ;;  %v3591_v37 = vcombine.low %v3582_v55, %v3589_v21  ;;  %v3598_v26 = vrot.slane %v3590_v45, %v5829_v30  ;;  %v4197_v39 = vcombine.low %v2748_v27, %v2752_v29  ;;  %v6389_v42 = vadd.f32 %v5803_v17, %v1816_v15  ;;  %v1822_v27 = vpop.xlane.xlu0 %1821 }
 0x4a6   : > { %v4198_v48 = vcombine.low %v2756_v31, %v2760_v34  ;;  %v4205_v13 = vrot.slane %v4195_v35, %v5829_v30  ;;  %v4212_v9 = vrot.slane %v4196_v58, %v5829_v30  ;;  %v2348_v49 = vrot.slane %v5931_v36, %v5800_v14 }
 0x4a7   : > { %v3605_v32 = vrot.slane %v3591_v37, %v5829_v30  ;;  %v4219_v41 = vrot.slane %v4197_v39, %v5829_v30  ;;  %v2352_v50 = vrot.slane %v5931_v36, %v5806_v18  ;;  %v2356_v40 = vrot.slane %v5931_v36, %v5809_v19 }
 0x4a8   : > { %v4226_v52 = vrot.slane %v4198_v48, %v5829_v30  ;;  %v4227_v54 = vcombine.low %v4205_v13, %v4212_v9  ;;  %v2360_v56 = vrot.slane %v5931_v36, %v5812_v20  ;;  %v2364_v57 = vrot.slane %v5931_v36, %v5815_v22 }
 0x4a9   : > { %v3606_v43 = vcombine.low %v3598_v26, %v3605_v32  ;;  %v2368_v3 = vrot.slane %v5931_v36, %v5818_v23  ;;  %v2372_v62 = vrot.slane %v5931_v36, %v5821_v24  ;;  %v2376_v60 = vrot.slane %v5931_v36, %v5824_v25 }
 0x4aa   : > { %v4228_v63 = vcombine.low %v4219_v41, %v4226_v52  ;;  %v4235_v0 = vrot.slane %v4227_v54, %v5829_v30  ;;  %v3607_v6 = vcombine.low %v2348_v49, %v2352_v50  ;;  %v3608_v1 = vcombine.low %v2356_v40, %v2360_v56 }
 0x4ab   : > { %4529 = vperm.xlu1 %5249, %v3606_v43   ;;  %v3609_v4 = vcombine.low %v2364_v57, %v2368_v3  ;;  %v3610_v28 = vcombine.low %v2372_v62, %v2376_v60  ;;  %v2764_v61 = vrot.slane %v6082_v51, %v5800_v14  ;;  %v2768_v5 = vrot.slane %v6082_v51, %v5806_v18 }
 0x4ac   : > { %v4242_v2 = vrot.slane %v4228_v63, %v5829_v30  ;;  %v3617_v7 = vrot.slane %v3607_v6, %v5829_v30  ;;  %v3624_v36 = vrot.slane %v3608_v1, %v5829_v30  ;;  %v2772_v53 = vrot.slane %v6082_v51, %v5809_v19 }
 0x4ad   : > { %v3631_v8 = vrot.slane %v3609_v4, %v5829_v30  ;;  %v3638_v55 = vrot.slane %v3610_v28, %v5829_v30  ;;  %v2776_v59 = vrot.slane %v6082_v51, %v5812_v20  ;;  %v2780_v10 = vrot.slane %v6082_v51, %v5815_v22 }
 0x4ae   : > { %v4243_v15 = vcombine.low %v4235_v0, %v4242_v2  ;;  %v3639_v16 = vcombine.low %v3617_v7, %v3624_v36  ;;  %v2784_v21 = vrot.slane %v6082_v51, %v5818_v23  ;;  %v2788_v45 = vrot.slane %v6082_v51, %v5821_v24 }
 0x4af   : > { %v3640_v29 = vcombine.low %v3631_v8, %v3638_v55  ;;  %v2792_v31 = vrot.slane %v6082_v51, %v5824_v25  ;;  %v4244_v34 = vcombine.low %v2764_v61, %v2768_v5  ;;  %v4245_v35 = vcombine.low %v2772_v53, %v2776_v59 }
 0x4b0   : > { %4568 = vperm.xlu0 %5250, %v4243_v15   ;;  %v3647_v58 = vrot.slane %v3639_v16, %v5829_v30  ;;  %v4246_v37 = vcombine.low %v2780_v10, %v2784_v21  ;;  %v6436_v26 = vadd.f32 %v5803_v17, %v1822_v27  ;;  %v2380_v39 = vrot.slane %v5928_v33, %v5800_v14 }
 0x4b1   : > { %v3654_v48 = vrot.slane %v3640_v29, %v5829_v30  ;;  %v4247_v13 = vcombine.low %v2788_v45, %v2792_v31  ;;  %v4254_v9 = vrot.slane %v4244_v34, %v5829_v30  ;;  %v4261_v49 = vrot.slane %v4245_v35, %v5829_v30 }
 0x4b2   : > { %v4268_v51 = vrot.slane %v4246_v37, %v5829_v30  ;;  %v2384_v32 = vrot.slane %v5928_v33, %v5806_v18  ;;  %v2388_v41 = vrot.slane %v5928_v33, %v5809_v19  ;;  %v2392_v17 = vrot.slane %v5928_v33, %v5812_v20 }
 0x4b3   : > { %v3655_v50 = vcombine.low %v3647_v58, %v3654_v48  ;;  %v4275_v40 = vrot.slane %v4247_v13, %v5829_v30  ;;  %v4276_v52 = vcombine.low %v4254_v9, %v4261_v49  ;;  %v2396_v54 = vrot.slane %v5928_v33, %v5815_v22 }
 0x4b4   : > { %v2400_v56 = vrot.slane %v5928_v33, %v5818_v23  ;;  %v2404_v57 = vrot.slane %v5928_v33, %v5821_v24  ;;  %v2408_v43 = vrot.slane %v5928_v33, %v5824_v25  ;;  %v3656_v3 = vcombine.low %v2380_v39, %v2384_v32 }
 0x4b5   : > { %4532 = vperm.xlu1 %5249, %v3655_v50   ;;  %v4277_v62 = vcombine.low %v4268_v51, %v4275_v40  ;;  %v4284_v60 = vrot.slane %v4276_v52, %v5829_v30  ;;  %v3657_v63 = vcombine.low %v2388_v41, %v2392_v17  ;;  %v2668_v0 = vrot.slane %v6201_v38, %v5800_v14 }
 0x4b6   : > { %v3658_v6 = vcombine.low %v2396_v54, %v2400_v56  ;;  %v3659_v1 = vcombine.low %v2404_v57, %v2408_v43  ;;  %v3666_v4 = vrot.slane %v3656_v3, %v5829_v30  ;;  %v2672_v28 = vrot.slane %v6201_v38, %v5806_v18 }
 0x4b7   : > { %v4291_v61 = vrot.slane %v4277_v62, %v5829_v30  ;;  %v3673_v33 = vrot.slane %v3657_v63, %v5829_v30  ;;  %v2676_v5 = vrot.slane %v6201_v38, %v5809_v19  ;;  %v2680_v2 = vrot.slane %v6201_v38, %v5812_v20 }
 0x4b8   : > { %v3680_v7 = vrot.slane %v3658_v6, %v5829_v30  ;;  %v3687_v36 = vrot.slane %v3659_v1, %v5829_v30  ;;  %v2684_v53 = vrot.slane %v6201_v38, %v5815_v22  ;;  %v2688_v8 = vrot.slane %v6201_v38, %v5818_v23 }
 0x4b9   : > { %v4292_v55 = vcombine.low %v4284_v60, %v4291_v61  ;;  %v3688_v59 = vcombine.low %v3666_v4, %v3673_v33  ;;  %v2692_v10 = vrot.slane %v6201_v38, %v5821_v24  ;;  %v2696_v27 = vrot.slane %v6201_v38, %v5824_v25 }
 0x4ba   : > { %v3689_v15 = vcombine.low %v3680_v7, %v3687_v36  ;;  %v4097_v16 = vcombine.low %v2668_v0, %v2672_v28  ;;  %v4098_v21 = vcombine.low %v2676_v5, %v2680_v2  ;;  %v4099_v45 = vcombine.low %v2684_v53, %v2688_v8 }
 0x4bb   : > { %4571 = vperm.xlu0 %5250, %v4292_v55   ;;  %v3696_v29 = vrot.slane %v3688_v59, %v5829_v30  ;;  %v4100_v31 = vcombine.low %v2692_v10, %v2696_v27  ;;  %v2700_v34 = vrot.slane %v6248_v44, %v5800_v14  ;;  %v2704_v35 = vrot.slane %v6248_v44, %v5806_v18 }
 0x4bc   : > { %v3703_v58 = vrot.slane %v3689_v15, %v5829_v30  ;;  %v4107_v37 = vrot.slane %v4097_v16, %v5829_v30  ;;  %v4114_v38 = vrot.slane %v4098_v21, %v5829_v30  ;;  %v4121_v39 = vrot.slane %v4099_v45, %v5829_v30 }
 0x4bd   : > { %v4128_v48 = vrot.slane %v4100_v31, %v5829_v30  ;;  %v2708_v13 = vrot.slane %v6248_v44, %v5809_v19  ;;  %v2712_v9 = vrot.slane %v6248_v44, %v5812_v20  ;;  %v2716_v49 = vrot.slane %v6248_v44, %v5815_v22 }
 0x4be   : > { %v3704_v51 = vcombine.low %v3696_v29, %v3703_v58  ;;  %v4129_v32 = vcombine.low %v4107_v37, %v4114_v38  ;;  %v2720_v41 = vrot.slane %v6248_v44, %v5818_v23  ;;  %v2724_v17 = vrot.slane %v6248_v44, %v5821_v24 }
 0x4bf   : > { %v4130_v50 = vcombine.low %v4121_v39, %v4128_v48  ;;  %v2728_v40 = vrot.slane %v6248_v44, %v5824_v25  ;;  %v4146_v52 = vcombine.low %v2700_v34, %v2704_v35  ;;  %v4147_v54 = vcombine.low %v2708_v13, %v2712_v9 }
 0x4c0   : > { %4535 = vperm.xlu1 %5249, %v3704_v51   ;;  %v4137_v56 = vrot.slane %v4129_v32, %v5829_v30  ;;  %v4148_v57 = vcombine.low %v2716_v49, %v2720_v41  ;;  %v2860_v43 = vrot.slane %v6295_v47, %v5800_v14  ;;  %v2864_v3 = vrot.slane %v6295_v47, %v5806_v18 }
 0x4c1   : > { %v4144_v62 = vrot.slane %v4130_v50, %v5829_v30  ;;  %v4149_v60 = vcombine.low %v2724_v17, %v2728_v40  ;;  %v4156_v63 = vrot.slane %v4146_v52, %v5829_v30  ;;  %v4163_v0 = vrot.slane %v4147_v54, %v5829_v30 }
 0x4c2   : > { %v4170_v44 = vrot.slane %v4148_v57, %v5829_v30  ;;  %v2868_v6 = vrot.slane %v6295_v47, %v5809_v19  ;;  %v2872_v1 = vrot.slane %v6295_v47, %v5812_v20  ;;  %v2876_v4 = vrot.slane %v6295_v47, %v5815_v22 }
 0x4c3   : > { %v4145_v28 = vcombine.low %v4137_v56, %v4144_v62  ;;  %v4177_v61 = vrot.slane %v4149_v60, %v5829_v30  ;;  %v4178_v33 = vcombine.low %v4156_v63, %v4163_v0  ;;  %v2880_v5 = vrot.slane %v6295_v47, %v5818_v23 }
 0x4c4   : > { %v2884_v2 = vrot.slane %v6295_v47, %v5821_v24  ;;  %v2888_v7 = vrot.slane %v6295_v47, %v5824_v25  ;;  %v4391_v36 = vcombine.low %v2860_v43, %v2864_v3  ;;  %v4392_v53 = vcombine.low %v2868_v6, %v2872_v1 }
 0x4c5   : > { %4562 = vperm.xlu0 %5250, %v4145_v28   ;;  %v4179_v8 = vcombine.low %v4170_v44, %v4177_v61  ;;  %v4186_v55 = vrot.slane %v4178_v33, %v5829_v30  ;;  %v4393_v59 = vcombine.low %v2876_v4, %v2880_v5  ;;  %v2796_v10 = vrot.slane %v6341_v46, %v5800_v14 }
 0x4c6   : > { %v4394_v27 = vcombine.low %v2884_v2, %v2888_v7  ;;  %v4401_v15 = vrot.slane %v4391_v36, %v5829_v30  ;;  %v4408_v16 = vrot.slane %v4392_v53, %v5829_v30  ;;  %v2800_v21 = vrot.slane %v6341_v46, %v5806_v18 }
 0x4c7   : > { %v4193_v47 = vrot.slane %v4179_v8, %v5829_v30  ;;  %v4415_v45 = vrot.slane %v4393_v59, %v5829_v30  ;;  %v2804_v29 = vrot.slane %v6341_v46, %v5809_v19  ;;  %v2808_v31 = vrot.slane %v6341_v46, %v5812_v20 }
 0x4c8   : > { %v4422_v34 = vrot.slane %v4394_v27, %v5829_v30  ;;  %v4423_v35 = vcombine.low %v4401_v15, %v4408_v16  ;;  %v2812_v58 = vrot.slane %v6341_v46, %v5815_v22  ;;  %v2816_v37 = vrot.slane %v6341_v46, %v5818_v23 }
 0x4c9   : > { %v4194_v38 = vcombine.low %v4186_v55, %v4193_v47  ;;  %v2820_v39 = vrot.slane %v6341_v46, %v5821_v24  ;;  %v2824_v48 = vrot.slane %v6341_v46, %v5824_v25  ;;  %v4293_v13 = vcombine.low %v2796_v10, %v2800_v21 }
 0x4ca   : > { %v4424_v9 = vcombine.low %v4415_v45, %v4422_v34  ;;  %v4431_v49 = vrot.slane %v4423_v35, %v5829_v30  ;;  %v4294_v51 = vcombine.low %v2804_v29, %v2808_v31  ;;  %v4295_v32 = vcombine.low %v2812_v58, %v2816_v37 }
 0x4cb   : > { %4565 = vperm.xlu0 %5250, %v4194_v38   ;;  %v4296_v41 = vcombine.low %v2820_v39, %v2824_v48  ;;  %v4303_v17 = vrot.slane %v4293_v13, %v5829_v30  ;;  %v2828_v50 = vrot.slane %v6389_v42, %v5800_v14  ;;  %v2832_v40 = vrot.slane %v6389_v42, %v5806_v18  ;;  %v4497_v39 = vpop.permute.xlu1 %4496 }
 0x4cc   : > { %v4438_v52 = vrot.slane %v4424_v9, %v5829_v30  ;;  %v4310_v46 = vrot.slane %v4294_v51, %v5829_v30  ;;  %v4317_v54 = vrot.slane %v4295_v32, %v5829_v30  ;;  %v2836_v56 = vrot.slane %v6389_v42, %v5809_v19  ;;  %v4491_v51 = vpop.permute.xlu0 %4490 }
 0x4cd   : > { %v4324_v57 = vrot.slane %v4296_v41, %v5829_v30  ;;  %v2840_v43 = vrot.slane %v6389_v42, %v5812_v20  ;;  %v2844_v3 = vrot.slane %v6389_v42, %v5815_v22  ;;  %v2848_v62 = vrot.slane %v6389_v42, %v5818_v23 }
 0x4ce   : > { %v4439_v60 = vcombine.low %v4431_v49, %v4438_v52  ;;  %v4325_v63 = vcombine.low %v4303_v17, %v4310_v46  ;;  %v2852_v0 = vrot.slane %v6389_v42, %v5821_v24  ;;  %v2856_v44 = vrot.slane %v6389_v42, %v5824_v25 }
 0x4cf   : > { %v4326_v6 = vcombine.low %v4317_v54, %v4324_v57  ;;  %v4342_v1 = vcombine.low %v2828_v50, %v2832_v40  ;;  %v4343_v4 = vcombine.low %v2836_v56, %v2840_v43  ;;  %v4344_v28 = vcombine.low %v2844_v3, %v2848_v62  ;;  %v6599_v48 = vpop.permute.xlu1 %4499 }
 0x4d0   : > { %4580 = vperm.xlu0 %5250, %v4439_v60   ;;  %v4333_v61 = vrot.slane %v4325_v63, %v5829_v30  ;;  %v4345_v33 = vcombine.low %v2852_v0, %v2856_v44  ;;  %v2892_v5 = vrot.slane %v6436_v26, %v5800_v14  ;;  %v2896_v2 = vrot.slane %v6436_v26, %v5806_v18 }
 0x4d1   : > { %v4340_v7 = vrot.slane %v4326_v6, %v5829_v30  ;;  %v4352_v36 = vrot.slane %v4342_v1, %v5829_v30  ;;  %v4359_v42 = vrot.slane %v4343_v4, %v5829_v30  ;;  %v4366_v53 = vrot.slane %v4344_v28, %v5829_v30 }
 0x4d2   : > { %v4373_v8 = vrot.slane %v4345_v33, %v5829_v30  ;;  %v2900_v55 = vrot.slane %v6436_v26, %v5809_v19  ;;  %v2904_v59 = vrot.slane %v6436_v26, %v5812_v20  ;;  %v2908_v14 = vrot.slane %v6436_v26, %v5815_v22 }
 0x4d3   : > { %v4341_v18 = vcombine.low %v4333_v61, %v4340_v7  ;;  %v4374_v10 = vcombine.low %v4352_v36, %v4359_v42  ;;  %v2912_v27 = vrot.slane %v6436_v26, %v5818_v23  ;;  %v2916_v15 = vrot.slane %v6436_v26, %v5821_v24  ;;  %v4494_v13 = vpop.permute.xlu1 %4493 }
 0x4d4   : > { %v4375_v16 = vcombine.low %v4366_v53, %v4373_v8  ;;  %v2920_v21 = vrot.slane %v6436_v26, %v5824_v25  ;;  %v4440_v47 = vcombine.low %v2892_v5, %v2896_v2  ;;  %v4441_v19 = vcombine.low %v2900_v55, %v2904_v59 }
 0x4d5   : > { %4574 = vperm.xlu0 %5250, %v4341_v18   ;;  %v4382_v20 = vrot.slane %v4374_v10, %v5829_v30  ;;  %v4442_v45 = vcombine.low %v2908_v14, %v2912_v27  ;;  %v6622_v60 = vand.u32 127, %v1829_v11 }
 0x4d6   : > { %v4389_v22 = vrot.slane %v4375_v16, %v5829_v30  ;;  %v4443_v29 = vcombine.low %v2916_v15, %v2920_v21  ;;  %v4450_v31 = vrot.slane %v4440_v47, %v5829_v30  ;;  %v4457_v23 = vrot.slane %v4441_v19, %v5829_v30 }
 0x4d7   : > { %v4464_v34 = vrot.slane %v4442_v45, %v5829_v30  ;;  %v6601_v9 = vpop.permute.xlu1 %4508  ;;  %v4591_v63 = vadd.s32 4294967288, %v6622_v60  ;;  %v4598_v1 = vadd.s32 4294967280, %v6622_v60  ;;  %v4589_v4 = vsub.s32 %v6622_v60, %v5797_v12 }
 0x4d8   : > { %v4390_v24 = vcombine.low %v4382_v20, %v4389_v22  ;;  %v4471_v35 = vrot.slane %v4443_v29, %v5829_v30  ;;  %v4472_v58 = vcombine.low %v4450_v31, %v4457_v23  ;;  %v4605_v33 = vadd.s32 4294967272, %v6622_v60 }
 0x4d9   : > { %v4594_v6 = vsub.s32 %v4591_v63, %v5797_v12  ;;  %v4601_v2 = vsub.s32 %v4598_v1, %v5797_v12  ;;  %v4612_v36 = vadd.s32 4294967264, %v6622_v60  ;;  %v4619_v55 = vadd.s32 4294967256, %v6622_v60 }
 0x4da   : > { %4577 = vperm.xlu0 %5250, %v4390_v24   ;;  %v4473_v25 = vcombine.low %v4464_v34, %v4471_v35  ;;  %v4480_v26 = vrot.slane %v4472_v58, %v5829_v30  ;;  %v4608_v53 = vsub.s32 %v4605_v33, %v5797_v12  ;;  %v4590_v18 = vrot.slane %v4491_v51, %v4589_v4 }
 0x4db   : > { %v6603_v49 = vpop.permute.xlu1 %4511  ;;  %v4595_v8 = vrot.slane %v4494_v13, %v4594_v6  ;;  %v4615_v27 = vsub.s32 %v4612_v36, %v5797_v12  ;;  %v4622_v16 = vsub.s32 %v4619_v55, %v5797_v12  ;;  %v4602_v47 = vrot.slane %v4497_v39, %v4601_v2 }
 0x4dc   : > { %v4487_v37 = vrot.slane %v4473_v25, %v5829_v30  ;;  %v4626_v19 = vadd.s32 4294967248, %v6622_v60  ;;  %v4633_v22 = vadd.s32 4294967240, %v6622_v60  ;;  %v4640_v24 = vadd.s32 4294967232, %v6622_v60 }
 0x4dd   : > { %v4597_v15 = vsel %vm4596_vm2, %v4595_v8, %v4590_v18  ;;  %v4609_v58 = vrot.slane %v6599_v48, %v4608_v53  ;;  %v4661_v1 = vadd.s32 4294967208, %v6622_v60  ;;  %v4689_v55 = vadd.s32 4294967176, %v6622_v60 }
 0x4de   : > { %v4488_v38 = vcombine.low %v4480_v26, %v4487_v37  ;;  %v4604_v23 = vsel %vm4603_vm3, %v4602_v47, %v4597_v15  ;;  %v4647_v26 = vadd.s32 4294967224, %v6622_v60  ;;  %v4629_v37 = vsub.s32 %v4626_v19, %v5797_v12 }
 0x4df   : > { %v6605_v32 = vpop.permute.xlu1 %4502  ;;  %v4611_v39 = vsel %vm4610_vm4, %v4609_v58, %v4604_v23  ;;  %v4664_v18 = vsub.s32 %v4661_v1, %v5797_v12 }
 0x4e0   : > { %4583 = vperm.xlu0 %5250, %v4488_v38   ;;  %v4616_v34 = vrot.slane %v6605_v32, %v4615_v27  ;;  %v4636_v38 = vsub.s32 %v4633_v22, %v5797_v12  ;;  %v4643_v32 = vsub.s32 %v4640_v24, %v5797_v12 }
 0x4e2   : > { %v4618_v51 = vsel %vm4617_vm5, %v4616_v34, %v4611_v39 }
 0x4e3   : > { %v6607_v17 = vpop.permute.xlu1 %4505 }
 0x4e4   : > { %v4623_v25 = vrot.slane %v6607_v17, %v4622_v16 }
 0x4e6   : > { %v4625_v17 = vsel %vm4624_vm6, %v4623_v25, %v4618_v51 }
 0x4e7   : > { %v6609_v40 = vpop.permute.xlu1 %4520 }
 0x4eb   : > { %v6613_v46 = vpop.permute.xlu1 %4523 }
 0x4ec   : > { %v4665_v23 = vrot.slane %v6613_v46, %v4664_v18 }
 0x4ee   : > { %v4545_v41 = vpop.permute.xlu0 %4544 }
 0x4ef   : > { %v4708_v42 = vrot.slane %v4545_v41, %v4601_v2  ;;  %v4675_v2 = vadd.s32 4294967192, %v6622_v60 }
 0x4f4   : > { %v6617_v56 = vpop.permute.xlu1 %4514 }
 0x4f5   : > { %v4644_v33 = vrot.slane %v6617_v56, %v4643_v32 }
 0x4f9   : > { %v4548_v50 = vpop.permute.xlu0 %4547 }
 0x4fa   : > { %v4713_v10 = vrot.slane %v4548_v50, %v4608_v53 }
 0x4ff   : > { %v6619_v43 = vpop.permute.xlu1 %4517 }
 0x504   : > { %v6611_v52 = vpop.permute.xlu0 %4556 }
 0x505   : > { %v4728_v41 = vrot.slane %v6611_v52, %v4629_v37 }
 0x509   : > { %v4539_v62 = vpop.permute.xlu1 %4538 }
 0x50a   : > { %v4699_v5 = vrot.slane %v4539_v62, %v4589_v4  ;;  %v4654_v62 = vadd.s32 4294967216, %v6622_v60 }
 0x50f   : > { %v6615_v54 = vpop.permute.xlu0 %4559 }
 0x510   : > { %v4733_v52 = vrot.slane %v6615_v54, %v4636_v38 }
 0x514   : > { %v4542_v44 = vpop.permute.xlu1 %4541 }
 0x515   : > { %v4703_v28 = vrot.slane %v4542_v44, %v4594_v6  ;;  %v4637_v6 = vrot.slane %v6603_v49, %v4636_v38  ;;  %v4657_v49 = vsub.s32 %v4654_v62, %v5797_v12 }
 0x517   : > { %v4704_v7 = vsel %vm4596_vm2, %v4703_v28, %v4699_v5  ;;  %v4668_v5 = vadd.s32 4294967200, %v6622_v60  ;;  %v4658_v15 = vrot.slane %v6609_v40, %v4657_v49 }
 0x518   : > { %v4709_v14 = vsel %vm4603_vm3, %v4708_v42, %v4704_v7  ;;  %v4682_v42 = vadd.s32 4294967184, %v6622_v60 }
 0x519   : > { %v4551_v57 = vpop.permute.xlu0 %4550  ;;  %v4714_v21 = vsel %vm4610_vm4, %v4713_v10, %v4709_v14  ;;  %v4671_v14 = vsub.s32 %v4668_v5, %v5797_v12 }
 0x51a   : > { %v4718_v20 = vrot.slane %v4551_v57, %v4615_v27  ;;  %v4650_v57 = vsub.s32 %v4647_v26, %v5797_v12  ;;  %v4678_v27 = vsub.s32 %v4675_v2, %v5797_v12 }
 0x51c   : > { %v4719_v35 = vsel %vm4617_vm5, %v4718_v20, %v4714_v21  ;;  %v4692_v20 = vsub.s32 %v4689_v55, %v5797_v12 }
 0x51f   : > { %v6643_v45 = vpop.permute.xlu1 %4526 }
 0x524   : > { %v4554_v3 = vpop.permute.xlu0 %4553 }
 0x525   : > { %v4723_v29 = vrot.slane %v4554_v3, %v4622_v16  ;;  %v4630_v3 = vrot.slane %v6601_v9, %v4629_v37  ;;  %v4651_v9 = vrot.slane %v6619_v43, %v4650_v57  ;;  %v4685_v16 = vsub.s32 %v4682_v42, %v5797_v12 }
 0x527   : > { %v4724_v13 = vsel %vm4624_vm6, %v4723_v29, %v4719_v35  ;;  %v4632_v28 = vsel %vm4631_vm7, %v4630_v3, %v4625_v17  ;;  %v4672_v29 = vrot.slane %v6643_v45, %v4671_v14 }
 0x528   : > { %v4729_v63 = vsel %vm4631_vm7, %v4728_v41, %v4724_v13  ;;  %v4639_v8 = vsel %vm4638_vm8, %v4637_v6, %v4632_v28 }
 0x529   : > { %v4734_v7 = vsel %vm4638_vm8, %v4733_v52, %v4729_v63 }
 0x52a   : > { %v6657_v50 = vpop.permute.xlu1 %4529 }
 0x52b   : > { %v4679_v40 = vrot.slane %v6657_v50, %v4678_v27 }
 0x52f   : > { %v6625_v0 = vpop.permute.xlu0 %4568 }
 0x530   : > { %v4748_v43 = vrot.slane %v6625_v0, %v4657_v49 }
 0x534   : > { %v4533_v54 = vpop.permute.xlu1 %4532 }
 0x535   : > { %v4686_v24 = vrot.slane %v4533_v54, %v4685_v16 }
 0x53a   : > { %v6631_v61 = vpop.permute.xlu0 %4571 }
 0x53b   : > { %v4753_v19 = vrot.slane %v6631_v61, %v4664_v18 }
 0x544   : > { %v4563_v59 = vpop.permute.xlu0 %4562 }
 0x545   : > { %v4738_v44 = vrot.slane %v4563_v59, %v4643_v32  ;;  %v4646_v59 = vsel %vm4645_vm9, %v4644_v33, %v4639_v8 }
 0x546   : > { %v4653_v10 = vsel %vm4652_vm10, %v4651_v9, %v4646_v59 }
 0x547   : > { %v4739_v53 = vsel %vm4645_vm9, %v4738_v44, %v4734_v7  ;;  %v4660_v0 = vsel %vm4659_vm11, %v4658_v15, %v4653_v10 }
 0x548   : > { %v4667_v61 = vsel %vm4666_vm12, %v4665_v23, %v4660_v0 }
 0x549   : > { %v4674_v25 = vsel %vm4673_vm13, %v4672_v29, %v4667_v61 }
 0x54a   : > { %v4566_v31 = vpop.permute.xlu0 %4565  ;;  %v4681_v46 = vsel %vm4680_vm14, %v4679_v40, %v4674_v25 }
 0x54b   : > { %v4743_v4 = vrot.slane %v4566_v31, %v4650_v57  ;;  %v4536_v31 = vpop.permute.xlu1 %4535  ;;  %v4688_v38 = vsel %vm4687_vm15, %v4686_v24, %v4681_v46 }
 0x54c   : > { %v4693_v12 = vrot.slane %v4536_v31, %v4692_v20 }
 0x54d   : > { %v4744_v56 = vsel %vm4652_vm10, %v4743_v4, %v4739_v53 }
 0x54e   : > { %v4749_v21 = vsel %vm4659_vm11, %v4748_v43, %v4744_v56  ;;  %v4695_v13 = vsel %vm4694_vm0, %v4693_v12, %v4688_v38 }
 0x54f   : > { %v6659_v48 = vpop.permute.xlu0 %4580  ;;  %v4754_v34 = vsel %vm4666_vm12, %v4753_v19, %v4749_v21 }
 0x550   : > { %v4768_v45 = vrot.slane %v6659_v48, %v4685_v16 }
 0x554   : > { %v4575_v36 = vpop.permute.xlu0 %4574 }
 0x555   : > { %v4758_v47 = vrot.slane %v4575_v36, %v4671_v14 }
 0x557   : > { %v4759_v35 = vsel %vm4673_vm13, %v4758_v47, %v4754_v34 }
 0x559   : > { %v4578_v60 = vpop.permute.xlu0 %4577 }
 0x55a   : > { %v4763_v22 = vrot.slane %v4578_v60, %v4678_v27 }
 0x55c   : > { %v4764_v58 = vsel %vm4680_vm14, %v4763_v22, %v4759_v35 }
 0x55d   : > { %v4769_v39 = vsel %vm4687_vm15, %v4768_v45, %v4764_v58 }
 0x55f   : > { %v4584_v26 = vpop.permute.xlu0 %4583 }
 0x560   : > { %v4773_v37 = vrot.slane %v4584_v26, %v4692_v20 }
 0x562   : > { %v4774_v51 = vsel %vm4694_vm0, %v4773_v37, %v4769_v39 }
 0x563   : > { %v4775_v32 = vcombine.low %v4695_v13, %v4774_v51 }
 0x565   : > { %v4782_v41 = vrot.slane %v4775_v32, %v5829_v30 }
 0x567   : > { %v4789_v50 = vrot.slane %v4782_v41, %v5829_v30 }
 0x569   : > { %4795 = vst.msk [vmem:[%s382_s25] sm:$0x3] %vm4793_vm1, %v4789_v50 }
 0x56a   : > { %5292 = shalt.err (!%p5289_p3)
}
 0x56b   : > { %s5293_s13 = scalar_lea.hbm %s6696_s12, 32  ;;  %s5297_s26 = scalar_lea.hbm %s6751_s11, 64 }
 0x56c   : > { %p5294_p4 = scmp.ne.s32.totalorder %s6696_s12, %s5293_s13  ;;  %p5298_p9 = scmp.lt.u32.totalorder %s6696_s12, %s6751_s11 }
 0x56d   : > { %p5299_p10 = scmp.lt.u32.totalorder %s5297_s26, %s5293_s13  ;;  %p5301_p12 = scmp.lt.u32.totalorder %s5293_s13, %s6696_s12 }
 0x56e   : > { %p5295_p7 = pnand %p5294_p4, %p5444_p5 }
 0x56f   : > { %p5300_p11 = por %p5299_p10, %p5298_p9 }
 0x570   : > { %p5296_p8 = pneg %p5295_p7 }
 0x571   : > { %p5302_p13 = por %p5301_p12, %p5300_p11 }
 0x573   : > { %p5303_p0 = pnand %p5302_p13, %p5296_p8 }
 0x575   : > { %5306 = shalt.err (!%p5303_p0)
}
 0x576   : > { %5208 = dma.vmem_to_hbm [thread:$0]  (%p5444_p5), %s6698_s10, 32, %s6696_s12, %s4797_s14  }
 0x577 PF: > { %p5214_p1 = scmp.ge.s32.totalorder %s5341_s22, 2  ;;  %s4823_s15 = sand.u32 1, %s5329_s19  }
 0x578   : > { %s4824_s17 = scalar_lea.sflag [#allocation4], %s4823_s15 }
 0x579   : > { %p5211_p2 = pnand %p5214_p1, %p5448_p6 }
 0x57b   : > { %5324 = dma.done.wait (!%p5211_p2), %s4824_s17, 32  }
 0x57c   : > { %5326 = vsyncadd (!%p5211_p2), %s4824_s17, 4294967264  ;;  %p23_p3 = scmp.ge.s32.totalorder %s5432_s24, 4   ;;  %s6754_s19 = smov %s5333_s20 }
 0x57d   : > { %s6755_s20 = smov %s5337_s21  ;;  %s6756_s21 = smov %s5442_s27 }
 0x57e   : > { %s6757_s22 = smov %s5432_s24  ;;  %25 = sbr.rel (!%p23_p3) target bundleno = 6 (0x6), region = 99 }
 0x585   :  { %4829 = vsyncpa [#allocation4], 1 }
 0x586   :  { %4831 = vsyncpa [#allocation4 + $0x1], 1 }

</bundles_post_ra>
